<compile_context>
chip_gen: v5e
topology: v5e:2x2
jax: 0.10.0
libtpu: 0.0.40
codegen_flags: <defaults>
</compile_context>

<pallas_src>
import math

import jax
import jax.numpy as jnp
import numpy as np
from jax import lax
from jax.experimental import pallas as pl
from jax.experimental.pallas import tpu as pltpu


def _round_up(x, m):
    return (x + m - 1) // m * m


def _rows_per_chunk(wp_pad, h_out, target_lanes):
    """Output rows per M-chunk.

    Prefer chunks whose flattened width (rows * wp_pad) is a multiple of 128 so
    every chunk's channel-major store is lane-aligned and unmasked, targeting
    roughly `target_lanes` lanes per chunk (bounds the f32 register acc).
    """
    align = 128 // math.gcd(128, wp_pad)
    rows = align
    while (rows + align) * wp_pad <= target_lanes:
        rows += align
    if rows * wp_pad > 2 * target_lanes:   # alignment too costly -> small chunks
        rows = max(1, target_lanes // wp_pad)
    return max(1, min(rows, h_out))


def basic_conv2d(x, weight, gamma, beta, running_mean, running_var,
                 eps=1e-3, stride=(1, 1), padding=(1, 1)):
    """Fused Conv2d(bias=False) + BatchNorm2d(eps) [inference] + ReLU.

    x: (N, C_in, H, W) f32, weight: (C_out, C_in, KH, KW) f32.
    Returns (N, C_out, H_out, W_out) f32 (NCHW, like the PyTorch module).
    Note: conv inputs/weights are computed in bf16 with f32 accumulation, so
    results differ from a pure-f32 reference at the ~1e-2 level.
    """
    if isinstance(padding, int):
        padding = (padding, padding)
    if isinstance(stride, int):
        stride = (stride, stride)
    assert tuple(stride) == (1, 1), "Pallas path supports stride=1 only"

    n, c_in, h, w = x.shape
    c_out, wc_in, kh, kw = weight.shape
    assert wc_in == c_in, "grouped conv not supported"
    ph, pw = padding
    h_out = h + 2 * ph - kh + 1
    w_out = w + 2 * pw - kw + 1
    assert h_out > 0 and w_out > 0

    hp = h + 2 * ph                              # padded rows (= h_out + kh - 1)
    # Pad the width so (rows, wp_pad, C) merges into (rows*wp_pad, C) without
    # relayout (bf16 sublane tile = 16); columns >= w_out are garbage that the
    # wrapper slices off after the kernel.
    wp_pad = _round_up(w + 2 * pw, 16)
    cinp = _round_up(c_in, 16)                   # bf16 packs 16 sublanes / vreg
    tco = 256 if c_out > 128 else 128            # 256-wide passes fill v6e/v7x MXU
    coutp = _round_up(c_out, tco)
    n_co = coutp // tco
    kc = kw * cinp                               # folded contraction depth
    m_p = h_out * wp_pad

    # ---- Input: NCHW -> zero/channel-padded NHWC, width-unrolled over KW ----
    x_nhwc = jnp.transpose(x, (0, 2, 3, 1))                         # (N,H,W,C)
    x_pad = jnp.pad(
        x_nhwc, ((0, 0), (ph, ph), (pw, wp_pad - w - pw), (0, cinp - c_in)))
    x_wide = jnp.pad(x_pad, ((0, 0), (0, 0), (0, kw - 1), (0, 0)))
    # channel group dj holds the image shifted left by dj columns
    x_fold = jnp.concatenate(
        [x_wide[:, :, dj:dj + wp_pad, :] for dj in range(kw)], axis=-1)
    x_fold = x_fold.reshape(n, hp * wp_pad, kc).astype(jnp.bfloat16)

    # ---- Fold inference-mode BN into conv weights + a bias vector ----------
    scale = gamma / jnp.sqrt(running_var + eps)                     # (C_out,)
    bias = beta - running_mean * scale                              # (C_out,)
    w_f = weight * scale[:, None, None, None]                       # (Co,Ci,KH,KW)
    w_t = jnp.transpose(w_f, (2, 0, 3, 1))                          # (KH,Co,KW,Ci)
    w_p = (jnp.zeros((kh, coutp, kw, cinp), jnp.float32)
           .at[:, :c_out, :, :c_in].set(w_t)
           .reshape(kh, coutp, kc).astype(jnp.bfloat16))            # (KH,Coutp,KW*Cinp)
    b_p = jnp.zeros((coutp, 1), jnp.float32).at[:c_out, 0].set(bias)

    rows_chunk = _rows_per_chunk(wp_pad, h_out, max(128, 32768 // tco))

    # ---- Kernel ------------------------------------------------------------
    def kernel(x_ref, w_ref, b_ref, o_ref):
        # x_ref: (1, Hp*Wp, KW*Cinp) bf16  padded, width-unrolled image
        # w_ref: (KH, tco, KW*Cinp)  bf16  BN-folded weights, output-major
        # b_ref: (tco, 1)            f32   folded BN bias
        # o_ref: (1, tco, Ho*Wp)     bf16  channel-major output slab
        w_all = [w_ref[di] for di in range(kh)]        # hoisted weight loads
        b_vec = b_ref[...]                             # (tco, 1)
        for h0 in range(0, h_out, rows_chunk):
            rows = min(rows_chunk, h_out - h0)
            cs = rows * wp_pad
            acc = None
            for di in range(kh):
                base = (h0 + di) * wp_pad              # tile-aligned sublane slice
                slab = x_ref[0, base:base + cs, :]     # (cs, KW*Cinp)
                d = lax.dot_general(
                    w_all[di], slab,
                    (((1,), (1,)), ((), ())),          # contract KW*Cinp
                    preferred_element_type=jnp.float32)  # (tco, cs)
                acc = d if acc is None else acc + d    # register accumulation
            y = jnp.maximum(acc + b_vec, 0.0)          # bias + ReLU in f32
            o_ref[0, :, h0 * wp_pad:h0 * wp_pad + cs] = y.astype(o_ref.dtype)

    flops = 2 * n * coutp * m_p * kh * kc
    bytes_accessed = (x_fold.size * 2 + n * (w_p.size * 2 + b_p.size * 4)
                      + n * coutp * m_p * 2)

    out = pl.pallas_call(
        kernel,
        out_shape=jax.ShapeDtypeStruct((n, coutp, m_p), jnp.bfloat16),
        grid_spec=pltpu.PrefetchScalarGridSpec(
            num_scalar_prefetch=0,
            grid=(n, n_co),
            in_specs=[
                pl.BlockSpec((1, hp * wp_pad, kc), lambda i, j: (i, 0, 0)),
                pl.BlockSpec((kh, tco, kc), lambda i, j: (0, j, 0)),
                pl.BlockSpec((tco, 1), lambda i, j: (j, 0)),
            ],
            out_specs=pl.BlockSpec((1, tco, m_p), lambda i, j: (i, j, 0)),
        ),
        compiler_params=pltpu.CompilerParams(
            dimension_semantics=("parallel", "parallel")),
        cost_estimate=pl.CostEstimate(
            flops=flops, transcendentals=0, bytes_accessed=bytes_accessed),
    )(x_fold, w_p, b_p)

    # (N, Coutp, Ho*Wp) -> NCHW; drop channel / width padding (no transpose).
    out = out.reshape(n, coutp, h_out, wp_pad)[:, :c_out, :, :w_out]
    return out.astype(jnp.float32)


def reference(x, weight, gamma, beta, running_mean, running_var,
              eps=1e-3, padding=(1, 1)):
    ph, pw = padding
    y = lax.conv_general_dilated(
        x, weight, window_strides=(1, 1), padding=((ph, ph), (pw, pw)),
        dimension_numbers=("NCHW", "OIHW", "NCHW"))
    s = (gamma / jnp.sqrt(running_var + eps)).reshape(1, -1, 1, 1)
    b = (beta - running_mean * gamma / jnp.sqrt(running_var + eps)).reshape(1, -1, 1, 1)
    return jnp.maximum(y * s + b, 0.0)


if __name__ == "__main__":
    key = jax.random.PRNGKey(0)
    k1, k2, k3, k4, k5, k6 = jax.random.split(key, 6)

    N, C_IN, H, W = 2, 4, 16, 16
    C_OUT, KH, KW = 8, 3, 3

    x = jax.random.normal(k1, (N, C_IN, H, W), jnp.float32)
    weight = jax.random.normal(k2, (C_OUT, C_IN, KH, KW), jnp.float32) * 0.1
    gamma = 1.0 + 0.1 * jax.random.normal(k3, (C_OUT,), jnp.float32)
    beta = 0.1 * jax.random.normal(k4, (C_OUT,), jnp.float32)
    running_mean = 0.1 * jax.random.normal(k5, (C_OUT,), jnp.float32)
    running_var = jnp.abs(jax.random.normal(k6, (C_OUT,), jnp.float32)) + 0.5

    out = basic_conv2d(x, weight, gamma, beta, running_mean, running_var,
                       padding=(1, 1))
    out = jax.block_until_ready(out)

    ref = reference(x, weight, gamma, beta, running_mean, running_var,
                    padding=(1, 1))
    # bf16 conv inputs (f32 accumulation) -> relaxed tolerance vs f32 reference.
    np.testing.assert_allclose(np.asarray(out), np.asarray(ref),
                               rtol=2e-2, atol=2e-2)
    print("KERNEL_OK")
</pallas_src>

<mosaic_0001>
module attributes {stable_mosaic.version = 11 : i64} {
  func.func @kernel(%arg0: i32, %arg1: i32, %arg2: memref<1x576x48xbf16, #tpu.memory_space<vmem>>, %arg3: memref<3x128x48xbf16, #tpu.memory_space<vmem>>, %arg4: memref<128x1xf32, #tpu.memory_space<vmem>>, %arg5: memref<1x128x512xbf16, #tpu.memory_space<vmem>>) attributes {dimension_semantics = [#tpu.dimension_semantics<parallel>, #tpu.dimension_semantics<parallel>], iteration_bounds = array<i64: 2, 1>, scalar_prefetch = 0 : i64, scratch_operands = 0 : i64, tpu.core_type = #tpu.core_type<tc>, window_params = [{transform_indices = @transform_0, window_bounds = array<i64: 1, 576, 48>}, {transform_indices = @transform_1, window_bounds = array<i64: 3, 128, 48>}, {transform_indices = @transform_2, window_bounds = array<i64: 128, 1>}, {transform_indices = @transform_3, window_bounds = array<i64: 1, 128, 512>}]} {
    %c0 = arith.constant 0 : index
    %c0_0 = arith.constant 0 : index
    %c0_1 = arith.constant 0 : index
    %0 = vector.load %arg3[%c0, %c0_0, %c0_1] : memref<3x128x48xbf16, #tpu.memory_space<vmem>>, vector<1x128x48xbf16>
    %1 = vector.shape_cast %0 : vector<1x128x48xbf16> to vector<128x48xbf16>
    %c1 = arith.constant 1 : index
    %c0_2 = arith.constant 0 : index
    %c0_3 = arith.constant 0 : index
    %2 = vector.load %arg3[%c1, %c0_2, %c0_3] : memref<3x128x48xbf16, #tpu.memory_space<vmem>>, vector<1x128x48xbf16>
    %3 = vector.shape_cast %2 : vector<1x128x48xbf16> to vector<128x48xbf16>
    %c2 = arith.constant 2 : index
    %c0_4 = arith.constant 0 : index
    %c0_5 = arith.constant 0 : index
    %4 = vector.load %arg3[%c2, %c0_4, %c0_5] : memref<3x128x48xbf16, #tpu.memory_space<vmem>>, vector<1x128x48xbf16>
    %5 = vector.shape_cast %4 : vector<1x128x48xbf16> to vector<128x48xbf16>
    %c0_6 = arith.constant 0 : index
    %c0_7 = arith.constant 0 : index
    %6 = vector.load %arg4[%c0_6, %c0_7] : memref<128x1xf32, #tpu.memory_space<vmem>>, vector<128x1xf32>
    %c0_8 = arith.constant 0 : index
    %c0_9 = arith.constant 0 : index
    %c0_10 = arith.constant 0 : index
    %7 = vector.load %arg2[%c0_8, %c0_9, %c0_10] : memref<1x576x48xbf16, #tpu.memory_space<vmem>>, vector<1x256x48xbf16>
    %8 = vector.shape_cast %7 : vector<1x256x48xbf16> to vector<256x48xbf16>
    %cst = arith.constant dense<0.000000e+00> : vector<128x256xf32>
    %9 = tpu.matmul %1, %8, %cst {dimension_numbers = #tpu.dot_dimension_numbers<[1], [1], [0], [0], [0, 0, 1, 0], [], []>} : vector<128x48xbf16>, vector<256x48xbf16>, vector<128x256xf32> -> vector<128x256xf32>
    %c0_11 = arith.constant 0 : index
    %c32 = arith.constant 32 : index
    %c0_12 = arith.constant 0 : index
    %10 = vector.load %arg2[%c0_11, %c32, %c0_12] : memref<1x576x48xbf16, #tpu.memory_space<vmem>>, vector<1x256x48xbf16>
    %11 = vector.shape_cast %10 : vector<1x256x48xbf16> to vector<256x48xbf16>
    %cst_13 = arith.constant dense<0.000000e+00> : vector<128x256xf32>
    %12 = tpu.matmul %3, %11, %cst_13 {dimension_numbers = #tpu.dot_dimension_numbers<[1], [1], [0], [0], [0, 0, 1, 0], [], []>} : vector<128x48xbf16>, vector<256x48xbf16>, vector<128x256xf32> -> vector<128x256xf32>
    %13 = arith.addf %9, %12 : vector<128x256xf32>
    %c0_14 = arith.constant 0 : index
    %c64 = arith.constant 64 : index
    %c0_15 = arith.constant 0 : index
    %14 = vector.load %arg2[%c0_14, %c64, %c0_15] : memref<1x576x48xbf16, #tpu.memory_space<vmem>>, vector<1x256x48xbf16>
    %15 = vector.shape_cast %14 : vector<1x256x48xbf16> to vector<256x48xbf16>
    %cst_16 = arith.constant dense<0.000000e+00> : vector<128x256xf32>
    %16 = tpu.matmul %5, %15, %cst_16 {dimension_numbers = #tpu.dot_dimension_numbers<[1], [1], [0], [0], [0, 0, 1, 0], [], []>} : vector<128x48xbf16>, vector<256x48xbf16>, vector<128x256xf32> -> vector<128x256xf32>
    %17 = arith.addf %13, %16 : vector<128x256xf32>
    %18 = vector.broadcast %6 : vector<128x1xf32> to vector<128x256xf32>
    %19 = arith.addf %17, %18 : vector<128x256xf32>
    %cst_17 = arith.constant 0.000000e+00 : f32
    %20 = vector.broadcast %cst_17 : f32 to vector<128x256xf32>
    %21 = arith.maximumf %19, %20 : vector<128x256xf32>
    %22 = arith.truncf %21 : vector<128x256xf32> to vector<128x256xbf16>
    %c0_18 = arith.constant 0 : index
    %c0_19 = arith.constant 0 : index
    %c0_20 = arith.constant 0 : index
    %23 = vector.load %arg5[%c0_18, %c0_19, %c0_20] : memref<1x128x512xbf16, #tpu.memory_space<vmem>>, vector<1x128x256xbf16>
    %24 = vector.shape_cast %23 : vector<1x128x256xbf16> to vector<128x256xbf16>
    %25 = vector.shape_cast %22 : vector<128x256xbf16> to vector<1x128x256xbf16>
    tpu.vector_store %arg5[%c0_18, %c0_19, %c0_20], %25 {strides = array<i32>} : memref<1x128x512xbf16, #tpu.memory_space<vmem>>, vector<1x128x256xbf16>,
    %c0_21 = arith.constant 0 : index
    %c256 = arith.constant 256 : index
    %c0_22 = arith.constant 0 : index
    %26 = vector.load %arg2[%c0_21, %c256, %c0_22] : memref<1x576x48xbf16, #tpu.memory_space<vmem>>, vector<1x256x48xbf16>
    %27 = vector.shape_cast %26 : vector<1x256x48xbf16> to vector<256x48xbf16>
    %cst_23 = arith.constant dense<0.000000e+00> : vector<128x256xf32>
    %28 = tpu.matmul %1, %27, %cst_23 {dimension_numbers = #tpu.dot_dimension_numbers<[1], [1], [0], [0], [0, 0, 1, 0], [], []>} : vector<128x48xbf16>, vector<256x48xbf16>, vector<128x256xf32> -> vector<128x256xf32>
    %c0_24 = arith.constant 0 : index
    %c288 = arith.constant 288 : index
    %c0_25 = arith.constant 0 : index
    %29 = vector.load %arg2[%c0_24, %c288, %c0_25] : memref<1x576x48xbf16, #tpu.memory_space<vmem>>, vector<1x256x48xbf16>
    %30 = vector.shape_cast %29 : vector<1x256x48xbf16> to vector<256x48xbf16>
    %cst_26 = arith.constant dense<0.000000e+00> : vector<128x256xf32>
    %31 = tpu.matmul %3, %30, %cst_26 {dimension_numbers = #tpu.dot_dimension_numbers<[1], [1], [0], [0], [0, 0, 1, 0], [], []>} : vector<128x48xbf16>, vector<256x48xbf16>, vector<128x256xf32> -> vector<128x256xf32>
    %32 = arith.addf %28, %31 : vector<128x256xf32>
    %c0_27 = arith.constant 0 : index
    %c320 = arith.constant 320 : index
    %c0_28 = arith.constant 0 : index
    %33 = vector.load %arg2[%c0_27, %c320, %c0_28] : memref<1x576x48xbf16, #tpu.memory_space<vmem>>, vector<1x256x48xbf16>
    %34 = vector.shape_cast %33 : vector<1x256x48xbf16> to vector<256x48xbf16>
    %cst_29 = arith.constant dense<0.000000e+00> : vector<128x256xf32>
    %35 = tpu.matmul %5, %34, %cst_29 {dimension_numbers = #tpu.dot_dimension_numbers<[1], [1], [0], [0], [0, 0, 1, 0], [], []>} : vector<128x48xbf16>, vector<256x48xbf16>, vector<128x256xf32> -> vector<128x256xf32>
    %36 = arith.addf %32, %35 : vector<128x256xf32>
    %37 = vector.broadcast %6 : vector<128x1xf32> to vector<128x256xf32>
    %38 = arith.addf %36, %37 : vector<128x256xf32>
    %cst_30 = arith.constant 0.000000e+00 : f32
    %39 = vector.broadcast %cst_30 : f32 to vector<128x256xf32>
    %40 = arith.maximumf %38, %39 : vector<128x256xf32>
    %41 = arith.truncf %40 : vector<128x256xf32> to vector<128x256xbf16>
    %c0_31 = arith.constant 0 : index
    %c0_32 = arith.constant 0 : index
    %c256_33 = arith.constant 256 : index
    %42 = vector.load %arg5[%c0_31, %c0_32, %c256_33] : memref<1x128x512xbf16, #tpu.memory_space<vmem>>, vector<1x128x256xbf16>
    %43 = vector.shape_cast %42 : vector<1x128x256xbf16> to vector<128x256xbf16>
    %44 = vector.shape_cast %41 : vector<128x256xbf16> to vector<1x128x256xbf16>
    tpu.vector_store %arg5[%c0_31, %c0_32, %c256_33], %44 {strides = array<i32>} : memref<1x128x512xbf16, #tpu.memory_space<vmem>>, vector<1x128x256xbf16>,
    return
  }
  func.func @transform_0(%arg0: i32, %arg1: i32) -> (i32, i32, i32) {
    %c0_i32 = arith.constant 0 : i32
    %c0_i32_0 = arith.constant 0 : i32
    %c0_i32_1 = arith.constant 0 : i32
    return %arg0, %c0_i32, %c0_i32_0 : i32, i32, i32
  }
  func.func @transform_1(%arg0: i32, %arg1: i32) -> (i32, i32, i32) {
    %c0_i32 = arith.constant 0 : i32
    %c0_i32_0 = arith.constant 0 : i32
    %c0_i32_1 = arith.constant 0 : i32
    return %c0_i32, %arg1, %c0_i32_0 : i32, i32, i32
  }
  func.func @transform_2(%arg0: i32, %arg1: i32) -> (i32, i32) {
    %c0_i32 = arith.constant 0 : i32
    %c0_i32_0 = arith.constant 0 : i32
    return %arg1, %c0_i32 : i32, i32
  }
  func.func @transform_3(%arg0: i32, %arg1: i32) -> (i32, i32, i32) {
    %c0_i32 = arith.constant 0 : i32
    %c0_i32_0 = arith.constant 0 : i32
    return %arg0, %arg1, %c0_i32 : i32, i32, i32
  }
}

</mosaic_0001>

<bundles_post_ra>
// kernel: tpu_custom_call.1
= control target key start
LH: loop header
LB: loop body
LE: loop exit
PB: predicated region body
PF: predicated region fallthrough
CT: control target
= control target key end

     0   :  { %8 = vsyncpa [#allocation3], 0  ;;  %s3951_s0 = inlined_call_operand.vmem [shape: bf16[2,576,48], index: 0, kind: input, shape index: {}]   ;;  %s3952_s1 = inlined_call_operand.vmem [shape: bf16[3,128,48], index: 1, kind: input, shape index: {}]   ;;  %s3953_s2 = inlined_call_operand.vmem [shape: f32[128,1], index: 2, kind: input, shape index: {}]   ;;  %s3954_s3 = inlined_call_operand.hbm [shape: bf16[2,128,512], index: 3, kind: output, shape index: {}]  }
   0x1   :  { %10 = vsyncpa [#allocation3 + $0x1], 0  ;;  %s2981_s12 = smov 0   ;;  %s2983_s13 = smov 0  }
   0x2   :  { %s2985_s14 = smov 0   ;;  %s2987_s15 = smov 0  }
   0x3   :  { %s2989_s16 = smov 0   ;;  %s2991_s17 = smov 0  }
   0x4 LB: > { %s2213_s18 = sadd.s32 4294967295, %s2956_s17   ;;  %s2214_s19 = sadd.s32 4294967294, %s2956_s17   ;;  %s2956_s17 = sphi %s2991_s17, %s16_s17   ;;  %s2952_s16 = sphi %s2989_s16, %s3961_s16   ;;  %s2948_s15 = sphi %s2987_s15, %s3960_s15   ;;  %s2944_s14 = sphi %s2985_s14, %s3959_s14   ;;  %s2940_s13 = sphi %s2983_s13, %s3958_s13   ;;  %s2936_s12 = sphi %s2981_s12, %s3957_s12  }
   0x5   : > { %s28_s20 = sadd.s32 1, %s2952_s16  ;;  %s115_s21 = sadd.s32 1, %s2944_s14 }
   0x6   : > { %p30_p0 = scmp.ge.s32.totalorder %s28_s20, 2  ;;  %p125_p1 = scmp.ne.s32.totalorder %s2944_s14, %s2940_s13 }
   0x7   : > { %p126_p2 = scmp.eq.s32.totalorder %s2213_s18, 1  ;;  %p131_p3 = scmp.ne.s32.totalorder %s2940_s13, %s2936_s12 }
   0x8   : > { %s3963_s20 = smov (%p30_p0, %s28_s20), 0  ;;  %p132_p5 = scmp.eq.s32.totalorder %s2214_s19, 1 }
   0x9   : > { %p3021_p4 = por %p126_p2, %p125_p1  ;;  %s110_s23 = ssub.s32 %s2952_s16, %s3963_s20 }
   0xa   : > { %p2219_p6 = scmp.ge.s32.totalorder %s2956_s17, 1  ;;  %p113_p7 = scmp.eq.s32.totalorder %s110_s23, 0 }
   0xb   : > { %p3028_p8 = por %p132_p5, %p131_p3  ;;  %p176_p9 = scmp.lt.s32.totalorder %s2956_s17, 3 }
   0xc   : > { %s3034_s25 = scalar_select %p113_p7, %s2944_s14, %s115_s21  }
   0xd   : > { %p177_p10 = pnand %p2219_p6, %p176_p9 }
   0xe   : > { %p210_p11 = scmp.lt.s32.totalorder (!%p177_p10), %s2948_s15, 1  ;;  %s207_s29 = sand.u32 (!%p177_p10), 1, %s2940_s13  }
   0xf   : > { %180 = sbr.rel (%p177_p10) target bundleno = 613 (0x265), region = 32  ;;  %s2220_s4 = sshll.u32 (!%p177_p10), %s207_s29, 8 }
  0x10   : > { %s3610_s5 = scalar_lea.vmem (!%p177_p10), [#allocation2], %s2220_s4  ;;  %s2815_s6 = sshll.u32 (!%p177_p10), %s2948_s15, 8 }
  0x11   : > { %s2106_s9 = scalar_lea.hbm (!%p177_p10), %s3954_s3, %s2815_s6  ;;  %s2092_s11 = scalar_lea.sflag (!%p177_p10), [#allocation3], %s207_s29 }
  0x12   : > { %s2109_s10 = sshll.u32 (!%p177_p10), %s2106_s9, 4  ;;  %s2898_s23 = scalar_lea.hbm (!%p177_p10), %s3954_s3, 512  ;;  %s2110_s10 = int_to_ptr.hbm [resolvable:$true] %s2109_s10 }
  0x14   : > { %s211_s26 = scalar_select %p210_p11, %s2948_s15, 1  ;;  %vm450_vm0 = vcmask 392192   ;;  %v3093_v44 = vld [vmem:[%s3952_s1 + $0x40] sm:$0xff]  ;;  %v3136_v62 = vld [vmem:[%s3952_s1 + $0x48] sm:$0xff] }
  0x15   : > { %v3100_v47 = vld [vmem:[%s3952_s1] sm:$0xff]  ;;  %v3141_v63 = vld [vmem:[%s3952_s1 + $0x8] sm:$0xff]  ;;  %s2107_s15 = sshll.u32 %s3610_s5, 4  ;;  %s2108_s15 = int_to_ptr.vmem [resolvable:$true] %s2107_s15 }
  0x16   : > { %s2816_s27 = smul.u32 288, %s211_s26 }
  0x18   : > { %s3041_s30 = scalar_lea.vmem %s3951_s0, %s2816_s27 }
  0x19   : > { %v2756_v0 = vld [vmem:[%s3041_s30 + $0x48] sm:$0xff]  ;;  %v2754_v2 = vld [vmem:[%s3041_s30 + $0x38] sm:$0xff]  ;;  %v2755_v8 = vld [vmem:[%s3041_s30 + $0x40] sm:$0xff] }
  0x1a   : > { %v2764_v1 = vld [vmem:[%s3041_s30 + $0x88] sm:$0xff]  ;;  %v2762_v3 = vld [vmem:[%s3041_s30 + $0x78] sm:$0xff]  ;;  %v497_v4 = vsel %vm450_vm0, %v2756_v0, 0  ;;  %v491_v6 = vsel %vm450_vm0, %v2754_v2, 0  ;;  %v2763_v9 = vld [vmem:[%s3041_s30 + $0x80] sm:$0xff]  ;;  %v494_v12 = vsel %vm450_vm0, %v2755_v8, 0 }
  0x1b   : > { %v521_v5 = vsel %vm450_vm0, %v2764_v1, 0  ;;  %523 = vmatpush.bf16.xpose.msra.mxu0 %v497_v4  ;;  %v515_v7 = vsel %vm450_vm0, %v2762_v3, 0  ;;  %701 = vmatpush.bf16.xpose.msra.mxu2 %v491_v6  ;;  %v2753_v10 = vld [vmem:[%s3041_s30 + $0x30] sm:$0xff]  ;;  %v518_v13 = vsel %vm450_vm0, %v2763_v9, 0  ;;  %v2752_v16 = vld [vmem:[%s3041_s30 + $0x28] sm:$0xff]  ;;  %v2751_v20 = vld [vmem:[%s3041_s30 + $0x20] sm:$0xff] }
  0x1c   : > { %572 = vmatpush.bf16.xpose.msra.mxu1 %v521_v5  ;;  %750 = vmatpush.bf16.xpose.msra.mxu3 %v515_v7  ;;  %v2761_v11 = vld [vmem:[%s3041_s30 + $0x70] sm:$0xff]  ;;  %v488_v14 = vsel %vm450_vm0, %v2753_v10, 0  ;;  %v2760_v17 = vld [vmem:[%s3041_s30 + $0x68] sm:$0xff]  ;;  %v485_v18 = vsel %vm450_vm0, %v2752_v16, 0  ;;  %v2759_v21 = vld [vmem:[%s3041_s30 + $0x60] sm:$0xff]  ;;  %v482_v22 = vsel %vm450_vm0, %v2751_v20, 0 }
  0x1d   : > { %v512_v15 = vsel %vm450_vm0, %v2761_v11, 0  ;;  %v509_v19 = vsel %vm450_vm0, %v2760_v17, 0  ;;  %v506_v23 = vsel %vm450_vm0, %v2759_v21, 0  ;;  %v2750_v24 = vld [vmem:[%s3041_s30 + $0x18] sm:$0xff]  ;;  %v2749_v28 = vld [vmem:[%s3041_s30 + $0x10] sm:$0xff]  ;;  %v2748_v32 = vld [vmem:[%s3041_s30 + $0x8] sm:$0xff] }
  0x1e   : > { %v2758_v25 = vld [vmem:[%s3041_s30 + $0x58] sm:$0xff]  ;;  %v479_v26 = vsel %vm450_vm0, %v2750_v24, 0  ;;  %v2757_v29 = vld [vmem:[%s3041_s30 + $0x50] sm:$0xff]  ;;  %v476_v30 = vsel %vm450_vm0, %v2749_v28, 0  ;;  %v699_v33 = vsel %vm450_vm0, %v2748_v32, 0  ;;  %v2747_v34 = vld [vmem:[%s3041_s30] sm:$0xff] }
  0x1f   : > { %v503_v27 = vsel %vm450_vm0, %v2758_v25, 0  ;;  %v500_v31 = vsel %vm450_vm0, %v2757_v29, 0  ;;  %v2790_v35 = vld [vmem:[%s3041_s30 + $0xc8] sm:$0xff]  ;;  %v2772_v37 = vld [vmem:[%s3041_s30 + $0x58] sm:$0xff]  ;;  %v696_v39 = vsel %vm450_vm0, %v2747_v34, 0  ;;  %v2789_v45 = vld [vmem:[%s3041_s30 + $0xc0] sm:$0xff] }
  0x20   : > { %v2798_v36 = vld [vmem:[%s3041_s30 + $0x108] sm:$0xff]  ;;  %v2780_v38 = vld [vmem:[%s3041_s30 + $0x98] sm:$0xff]  ;;  %v3084_v40 = vsel %vm450_vm0, %v2790_v35, 0  ;;  %v997_v42 = vsel %vm450_vm0, %v2772_v37, 0  ;;  %v2797_v46 = vld [vmem:[%s3041_s30 + $0x100] sm:$0xff]  ;;  %v3109_v50 = vsel %vm450_vm0, %v2789_v45, 0 }
  0x21   : > { %v1491_v41 = vsel %vm450_vm0, %v2798_v36, 0  ;;  %v1021_v43 = vsel %vm450_vm0, %v2780_v38, 0  ;;  %v2771_v48 = vld [vmem:[%s3041_s30 + $0x50] sm:$0xff]  ;;  %v1488_v51 = vsel %vm450_vm0, %v2797_v46, 0  ;;  %v2788_v54 = vld [vmem:[%s3041_s30 + $0xb8] sm:$0xff]  ;;  %v2770_v56 = vld [vmem:[%s3041_s30 + $0x48] sm:$0xff] }
  0x22   : > { %v2779_v49 = vld [vmem:[%s3041_s30 + $0x90] sm:$0xff]  ;;  %v994_v52 = vsel %vm450_vm0, %v2771_v48, 0  ;;  %v2796_v55 = vld [vmem:[%s3041_s30 + $0xf8] sm:$0xff]  ;;  %v2778_v57 = vld [vmem:[%s3041_s30 + $0x88] sm:$0xff]  ;;  %v3124_v58 = vsel %vm450_vm0, %v2788_v54, 0  ;;  %v991_v60 = vsel %vm450_vm0, %v2770_v56, 0 }
  0x23   : > { %524 = vmatpush.bf16.xpose.msra.mxu0 %v494_v12  ;;  %702 = vmatpush.bf16.xpose.msra.mxu2 %v488_v14  ;;  %v1018_v53 = vsel %vm450_vm0, %v2779_v49, 0  ;;  %v3127_v59 = vsel %vm450_vm0, %v2796_v55, 0  ;;  %v1015_v61 = vsel %vm450_vm0, %v2778_v57, 0  ;;  %v2787_v0 = vld [vmem:[%s3041_s30 + $0xb0] sm:$0xff]  ;;  %v2769_v2 = vld [vmem:[%s3041_s30 + $0x40] sm:$0xff]  ;;  %v2786_v10 = vld [vmem:[%s3041_s30 + $0xa8] sm:$0xff] }
  0x24   : > { %573 = vmatpush.bf16.xpose.msra.mxu1 %v518_v13  ;;  %751 = vmatpush.bf16.xpose.msra.mxu3 %v512_v15  ;;  %v2795_v1 = vld [vmem:[%s3041_s30 + $0xf0] sm:$0xff]  ;;  %v2777_v3 = vld [vmem:[%s3041_s30 + $0x80] sm:$0xff]  ;;  %v2794_v11 = vld [vmem:[%s3041_s30 + $0xe8] sm:$0xff] }
  0x25   : > { %v3159_v5 = vsel %vm450_vm0, %v2795_v1, 0  ;;  %v3168_v8 = vld [vmem:[%s3952_s1 + $0x50] sm:$0xff]  ;;  %v2776_v13 = vld [vmem:[%s3041_s30 + $0x78] sm:$0xff]  ;;  %v2785_v20 = vld [vmem:[%s3041_s30 + $0xa0] sm:$0xff] }
  0x26   : > { %v3173_v9 = vld [vmem:[%s3952_s1 + $0x10] sm:$0xff]  ;;  %v1009_v17 = vsel %vm450_vm0, %v2776_v13, 0  ;;  %v2793_v21 = vld [vmem:[%s3041_s30 + $0xe0] sm:$0xff]  ;;  %v3220_v24 = vsel %vm450_vm0, %v2785_v20, 0  ;;  %v2766_v32 = vld [vmem:[%s3041_s30 + $0x28] sm:$0xff] }
  0x27   : > { %v3223_v25 = vsel %vm450_vm0, %v2793_v21, 0  ;;  %v3232_v28 = vld [vmem:[%s3952_s1 + $0x60] sm:$0xff]  ;;  %v979_v36 = vsel %vm450_vm0, %v2766_v32, 0  ;;  %v3264_v38 = vld [vmem:[%s3952_s1 + $0x68] sm:$0xff]  ;;  %v2806_v54 = vld [vmem:[%s3041_s30 + $0xd8] sm:$0xff] }
  0x28   : > { %v3237_v29 = vld [vmem:[%s3952_s1 + $0x20] sm:$0xff]  ;;  %v2814_v55 = vld [vmem:[%s3041_s30 + $0x118] sm:$0xff]  ;;  %v1839_v56 = vsel %vm450_vm0, %v2806_v54, 0  ;;  %v2813_v1 = vld [vmem:[%s3041_s30 + $0x110] sm:$0xff] }
  0x29   : > { %v2773_v45 = vld [vmem:[%s3041_s30 + $0x60] sm:$0xff]  ;;  %v1863_v57 = vsel %vm450_vm0, %v2814_v55, 0  ;;  %v284_v54 = vld [vmem:[%s3953_s2 + $0x30] sm:$0xff]  ;;  %v2802_v55 = vld [vmem:[%s3041_s30 + $0xb8] sm:$0xff] }
  0x2a   : > { %v2811_v32 = vld [vmem:[%s3041_s30 + $0x100] sm:$0xff] }
  0x2b   : > { %525 = vmatpush.bf16.xpose.msra.mxu0 %v491_v6  ;;  %703 = vmatpush.bf16.xpose.msra.mxu2 %v485_v18  ;;  %v988_v6 = vsel %vm450_vm0, %v2769_v2, 0 }
  0x2c   : > { %574 = vmatpush.bf16.xpose.msra.mxu1 %v515_v7  ;;  %752 = vmatpush.bf16.xpose.msra.mxu3 %v509_v19  ;;  %v1012_v7 = vsel %vm450_vm0, %v2777_v3, 0  ;;  %v1860_v3 = vsel %vm450_vm0, %v2813_v1, 0 }
  0x33   : > { %526 = vmatpush.bf16.xpose.msra.mxu0 %v488_v14  ;;  %704 = vmatpush.bf16.xpose.msra.mxu2 %v482_v22  ;;  %v3188_v14 = vsel %vm450_vm0, %v2786_v10, 0  ;;  %v280_v10 = vld [vmem:[%s3953_s2 + $0x10] sm:$0xff] }
  0x34   : > { %575 = vmatpush.bf16.xpose.msra.mxu1 %v512_v15  ;;  %753 = vmatpush.bf16.xpose.msra.mxu3 %v506_v23  ;;  %v3191_v15 = vsel %vm450_vm0, %v2794_v11, 0  ;;  %v2804_v11 = vld [vmem:[%s3041_s30 + $0xc8] sm:$0xff] }
  0x35   : > { %v1833_v13 = vsel %vm450_vm0, %v2804_v11, 0  ;;  %v3438_v11 = vld [vmem:[%s3952_s1 + $0x98] sm:$0xff] }
  0x3b   : > { %527 = vmatpush.bf16.xpose.msra.mxu0 %v485_v18  ;;  %705 = vmatpush.bf16.xpose.msra.mxu2 %v479_v26  ;;  %v3200_v18 = vld [vmem:[%s3952_s1 + $0x58] sm:$0xff] }
  0x3c   : > { %576 = vmatpush.bf16.xpose.msra.mxu1 %v509_v19  ;;  %754 = vmatpush.bf16.xpose.msra.mxu3 %v503_v27  ;;  %v3205_v19 = vld [vmem:[%s3952_s1 + $0x18] sm:$0xff] }
  0x43   : > { %528 = vmatpush.bf16.xpose.msra.mxu0 %v482_v22  ;;  %706 = vmatpush.bf16.xpose.msra.mxu2 %v476_v30  ;;  %v2767_v22 = vld [vmem:[%s3041_s30 + $0x30] sm:$0xff] }
  0x44   : > { %577 = vmatpush.bf16.xpose.msra.mxu1 %v506_v23  ;;  %755 = vmatpush.bf16.xpose.msra.mxu3 %v500_v31  ;;  %v2775_v23 = vld [vmem:[%s3041_s30 + $0x70] sm:$0xff] }
  0x4b   : > { %529 = vmatpush.bf16.xpose.msra.mxu0 %v479_v26  ;;  %707 = vmatpush.bf16.xpose.msra.mxu2 %v699_v33  ;;  %v982_v26 = vsel %vm450_vm0, %v2767_v22, 0  ;;  %v2774_v33 = vld [vmem:[%s3041_s30 + $0x68] sm:$0xff] }
  0x4c   : > { %578 = vmatpush.bf16.xpose.msra.mxu1 %v503_v27  ;;  %756 = vmatpush.bf16.xpose.msra.mxu3 %v497_v4  ;;  %v3156_v4 = vsel %vm450_vm0, %v2787_v0, 0  ;;  %v1006_v27 = vsel %vm450_vm0, %v2775_v23, 0  ;;  %v1003_v37 = vsel %vm450_vm0, %v2774_v33, 0  ;;  %v2805_v0 = vld [vmem:[%s3041_s30 + $0xd0] sm:$0xff] }
  0x4d   : > { %v1836_v2 = vsel %vm450_vm0, %v2805_v0, 0 }
  0x53   : > { %530 = vmatpush.bf16.xpose.msra.mxu0 %v476_v30  ;;  %708 = vmatpush.bf16.xpose.msra.mxu2 %v696_v39  ;;  %v2784_v30 = vld [vmem:[%s3041_s30 + $0x98] sm:$0xff]  ;;  %v3269_v39 = vld [vmem:[%s3952_s1 + $0x28] sm:$0xff] }
  0x54   : > { %579 = vmatpush.bf16.xpose.msra.mxu1 %v500_v31  ;;  %757 = vmatpush.bf16.xpose.msra.mxu3 %v494_v12  ;;  %v2768_v12 = vld [vmem:[%s3041_s30 + $0x38] sm:$0xff]  ;;  %v3252_v34 = vsel %vm450_vm0, %v2784_v30, 0 }
  0x55   : > { %v985_v16 = vsel %vm450_vm0, %v2768_v12, 0  ;;  %v2792_v31 = vld [vmem:[%s3041_s30 + $0xd8] sm:$0xff]  ;;  %v2812_v12 = vld [vmem:[%s3041_s30 + $0x108] sm:$0xff] }
  0x56   : > { %v3255_v35 = vsel %vm450_vm0, %v2792_v31, 0 }
  0x5a   : > { %2350 = vmatmul.msk.bf16.vlgmr.msra.gmra.mxu0 %vm450_vm0, %v3093_v44  ;;  %2406 = vmatmul.msk.bf16.vlgmr.msra.gmra.mxu2 %vm450_vm0, %v3100_v47 }
  0x5b   : > { %1493 = vmatpush.bf16.xpose.msrb.mxu2 %v3084_v40  ;;  %1023 = vmatpush.bf16.xpose.msrb.mxu0 %v997_v42  ;;  %v2791_v42 = vld [vmem:[%s3041_s30 + $0xd0] sm:$0xff] }
  0x5c   : > { %1542 = vmatpush.bf16.xpose.msrb.mxu3 %v1491_v41  ;;  %1072 = vmatpush.bf16.xpose.msrb.mxu1 %v1021_v43  ;;  %v2783_v41 = vld [vmem:[%s3041_s30 + $0x90] sm:$0xff]  ;;  %v2765_v43 = vld [vmem:[%s3041_s30 + $0x20] sm:$0xff]  ;;  %v1470_v48 = vsel %vm450_vm0, %v2791_v42, 0 }
  0x5d   : > { %2358 = vmatmul.msk.bf16.vlgmr.msra.gmra.mxu1 %vm450_vm0, %v3093_v44  ;;  %2414 = vmatmul.msk.bf16.vlgmr.msra.gmra.mxu3 %vm450_vm0, %v3100_v47  ;;  %v1446_v46 = vsel %vm450_vm0, %v2783_v41, 0  ;;  %v976_v49 = vsel %vm450_vm0, %v2765_v43, 0 }
  0x63   : > { %1494 = vmatpush.bf16.xpose.msrb.mxu2 %v3109_v50  ;;  %1024 = vmatpush.bf16.xpose.msrb.mxu0 %v994_v52  ;;  %v3292_v52 = vld [vmem:[%s3952_s1 + $0x70] sm:$0xff] }
  0x64   : > { %1543 = vmatpush.bf16.xpose.msrb.mxu3 %v1488_v51  ;;  %1073 = vmatpush.bf16.xpose.msrb.mxu1 %v1018_v53  ;;  %v1000_v51 = vsel %vm450_vm0, %v2773_v45, 0  ;;  %v3297_v53 = vld [vmem:[%s3952_s1 + $0x30] sm:$0xff] }
  0x65   : > { %v3404_v45 = vld [vmem:[%s3952_s1 + $0x90] sm:$0xff] }
  0x6a   : > { %2351 = vmatmul.msk.bf16.gmra.mxu0 %vm450_vm0, %v3136_v62  ;;  %2407 = vmatmul.msk.bf16.gmra.mxu2 %vm450_vm0, %v3141_v63 }
  0x6b   : > { %1495 = vmatpush.bf16.xpose.msrb.mxu2 %v3124_v58  ;;  %1025 = vmatpush.bf16.xpose.msrb.mxu0 %v991_v60  ;;  %v2958_v60 = vmov 0  }
  0x6c   : > { %1544 = vmatpush.bf16.xpose.msrb.mxu3 %v3127_v59  ;;  %1074 = vmatpush.bf16.xpose.msrb.mxu1 %v1015_v61  ;;  %v278_v61 = vld [vmem:[%s3953_s2] sm:$0xff] }
  0x6d   : > { %2359 = vmatmul.msk.bf16.gmra.mxu1 %vm450_vm0, %v3136_v62  ;;  %2415 = vmatmul.msk.bf16.gmra.mxu3 %vm450_vm0, %v3141_v63 }
  0x6e   : > { %2875 = vset.pattern.permute.xlu0 %v2958_v60  ;;  %2876 = vset.pattern.permute.xlu1 %v2958_v60 }
  0x6f   : > { %1155 = vperm.xlu0 %2875, %v278_v61   ;;  %2877 = vset.pattern.permute.xlu2 %v2958_v60 }
  0x70   : > { %1165 = vperm.xlu1 %2876, %v280_v10  }
  0x73   : > { %1496 = vmatpush.bf16.xpose.msrb.mxu2 %v3156_v4  ;;  %1026 = vmatpush.bf16.xpose.msrb.mxu0 %v988_v6 }
  0x74   : > { %1545 = vmatpush.bf16.xpose.msrb.mxu3 %v3159_v5  ;;  %1075 = vmatpush.bf16.xpose.msrb.mxu1 %v1012_v7 }
  0x7a   : > { %2352 = vmatmul.msk.bf16.gmra.mxu0 %vm450_vm0, %v3168_v8  ;;  %2408 = vmatmul.msk.bf16.gmra.mxu2 %vm450_vm0, %v3173_v9 }
  0x7b   : > { %1497 = vmatpush.bf16.xpose.msrb.mxu2 %v3188_v14  ;;  %1027 = vmatpush.bf16.xpose.msrb.mxu0 %v985_v16 }
  0x7c   : > { %1546 = vmatpush.bf16.xpose.msrb.mxu3 %v3191_v15  ;;  %1076 = vmatpush.bf16.xpose.msrb.mxu1 %v1009_v17 }
  0x7d   : > { %2360 = vmatmul.msk.bf16.gmra.mxu1 %vm450_vm0, %v3168_v8  ;;  %2416 = vmatmul.msk.bf16.gmra.mxu3 %vm450_vm0, %v3173_v9 }
  0x83   : > { %1498 = vmatpush.bf16.xpose.msrb.mxu2 %v3220_v24  ;;  %1028 = vmatpush.bf16.xpose.msrb.mxu0 %v982_v26 }
  0x84   : > { %1547 = vmatpush.bf16.xpose.msrb.mxu3 %v3223_v25  ;;  %1077 = vmatpush.bf16.xpose.msrb.mxu1 %v1006_v27 }
  0x8a   : > { %2353 = vmatmul.msk.bf16.gmra.mxu0 %vm450_vm0, %v3200_v18  ;;  %2409 = vmatmul.msk.bf16.gmra.mxu2 %vm450_vm0, %v3205_v19 }
  0x8b   : > { %1499 = vmatpush.bf16.xpose.msrb.mxu2 %v3252_v34  ;;  %1029 = vmatpush.bf16.xpose.msrb.mxu0 %v979_v36 }
  0x8c   : > { %1548 = vmatpush.bf16.xpose.msrb.mxu3 %v3255_v35  ;;  %1078 = vmatpush.bf16.xpose.msrb.mxu1 %v1003_v37 }
  0x8d   : > { %2361 = vmatmul.msk.bf16.gmra.mxu1 %vm450_vm0, %v3200_v18  ;;  %2417 = vmatmul.msk.bf16.gmra.mxu3 %vm450_vm0, %v3205_v19 }
  0x93   : > { %1500 = vmatpush.bf16.xpose.msrb.mxu2 %v1446_v46  ;;  %1030 = vmatpush.bf16.xpose.msrb.mxu0 %v976_v49 }
  0x94   : > { %1549 = vmatpush.bf16.xpose.msrb.mxu3 %v1470_v48  ;;  %1079 = vmatpush.bf16.xpose.msrb.mxu1 %v1000_v51 }
  0x9a   : > { %2354 = vmatmul.msk.bf16.gmra.mxu0 %vm450_vm0, %v3232_v28  ;;  %2410 = vmatmul.msk.bf16.gmra.mxu2 %vm450_vm0, %v3237_v29 }
  0x9b   : > { %1607 = vmatpush.bf16.xpose.msra.mxu0 %v3124_v58  ;;  %1865 = vmatpush.bf16.xpose.msra.mxu2 %v1839_v56  ;;  %v3318_v58 = vld [vmem:[%s3952_s1 + $0x78] sm:$0xff] }
  0x9c   : > { %1656 = vmatpush.bf16.xpose.msra.mxu1 %v3127_v59  ;;  %1914 = vmatpush.bf16.xpose.msra.mxu3 %v1863_v57  ;;  %v3323_v59 = vld [vmem:[%s3952_s1 + $0x38] sm:$0xff]  ;;  %v1827_v57 = vsel %vm450_vm0, %v2802_v55, 0 }
  0x9d   : > { %2362 = vmatmul.msk.bf16.gmra.mxu1 %vm450_vm0, %v3232_v28  ;;  %2418 = vmatmul.msk.bf16.gmra.mxu3 %vm450_vm0, %v3237_v29  ;;  %v2810_v56 = vld [vmem:[%s3041_s30 + $0xf8] sm:$0xff] }
  0x9e   : > { %v1851_v60 = vsel %vm450_vm0, %v2810_v56, 0 }
  0xa3   : > { %1608 = vmatpush.bf16.xpose.msra.mxu0 %v3156_v4  ;;  %1866 = vmatpush.bf16.xpose.msra.mxu2 %v1836_v2  ;;  %v279_v4 = vld [vmem:[%s3953_s2 + $0x8] sm:$0xff] }
  0xa4   : > { %1657 = vmatpush.bf16.xpose.msra.mxu1 %v3159_v5  ;;  %1915 = vmatpush.bf16.xpose.msra.mxu3 %v1860_v3  ;;  %v3350_v5 = vld [vmem:[%s3952_s1 + $0x80] sm:$0xff] }
  0xa5   : > { %1160 = vperm.xlu0 %2875, %v279_v4  }
  0xaa   : > { %2355 = vmatmul.msk.bf16.gmra.mxu0 %vm450_vm0, %v3264_v38  ;;  %2411 = vmatmul.msk.bf16.gmra.mxu2 %vm450_vm0, %v3269_v39 }
  0xab   : > { %1609 = vmatpush.bf16.xpose.msra.mxu0 %v3188_v14  ;;  %v1857_v14 = vsel %vm450_vm0, %v2812_v12, 0  ;;  %1867 = vmatpush.bf16.xpose.msra.mxu2 %v1833_v13 }
  0xac   : > { %1658 = vmatpush.bf16.xpose.msra.mxu1 %v3191_v15  ;;  %1916 = vmatpush.bf16.xpose.msra.mxu3 %v1857_v14 }
  0xad   : > { %2363 = vmatmul.msk.bf16.gmra.mxu1 %vm450_vm0, %v3264_v38  ;;  %2419 = vmatmul.msk.bf16.gmra.mxu3 %vm450_vm0, %v3269_v39 }
  0xae   : > { %1185 = vperm.xlu0 %2875, %v284_v54   ;;  %v2808_v54 = vld [vmem:[%s3041_s30 + $0xe8] sm:$0xff] }
  0xaf   : > { %v1845_v56 = vsel %vm450_vm0, %v2808_v54, 0 }
  0xb3   : > { %1610 = vmatpush.bf16.xpose.msra.mxu0 %v3220_v24 }
  0xb4   : > { %1659 = vmatpush.bf16.xpose.msra.mxu1 %v3223_v25  ;;  %v3378_v25 = vld [vmem:[%s3952_s1 + $0x88] sm:$0xff] }
  0xba   : > { %2356 = vmatmul.msk.bf16.gmra.mxu0 %vm450_vm0, %v3292_v52  ;;  %2412 = vmatmul.msk.bf16.gmra.mxu2 %vm450_vm0, %v3297_v53 }
  0xbb   : > { %1611 = vmatpush.bf16.xpose.msra.mxu0 %v3252_v34  ;;  %v1854_v34 = vsel %vm450_vm0, %v2811_v32, 0 }
  0xbc   : > { %1660 = vmatpush.bf16.xpose.msra.mxu1 %v3255_v35  ;;  %1917 = vmatpush.bf16.xpose.msra.mxu3 %v1854_v34 }
  0xbd   : > { %2364 = vmatmul.msk.bf16.gmra.mxu1 %vm450_vm0, %v3292_v52  ;;  %2420 = vmatmul.msk.bf16.gmra.mxu3 %vm450_vm0, %v3297_v53 }
  0xc3   : > { %1612 = vmatpush.bf16.xpose.msra.mxu0 %v1446_v46 }
  0xc4   : > { %1661 = vmatpush.bf16.xpose.msra.mxu1 %v1470_v48  ;;  %1918 = vmatpush.bf16.xpose.msra.mxu3 %v1851_v60 }
  0xca   : > { %2357 = vmatmul.msk.bf16.gmra.mxu0 %vm450_vm0, %v3318_v58  ;;  %2413 = vmatmul.msk.bf16.gmra.mxu2 %vm450_vm0, %v3323_v59 }
  0xcc   : > { %1662 = vmatpush.bf16.xpose.msra.mxu1 %v3084_v40  ;;  %v2803_v40 = vld [vmem:[%s3041_s30 + $0xc0] sm:$0xff] }
  0xcd   : > { %2365 = vmatmul.msk.bf16.gmra.mxu1 %vm450_vm0, %v3318_v58  ;;  %2421 = vmatmul.msk.bf16.gmra.mxu3 %vm450_vm0, %v3323_v59  ;;  %v1830_v33 = vsel %vm450_vm0, %v2803_v40, 0 }
  0xce   : > { %1868 = vmatpush.bf16.xpose.msra.mxu2 %v1830_v33 }
  0xd4   : > { %1663 = vmatpush.bf16.xpose.msra.mxu1 %v3109_v50 }
  0xd6   : > { %1869 = vmatpush.bf16.xpose.msra.mxu2 %v1827_v57 }
  0xd7   : > { %v532_v6 = vpop.f32.mrf.mxu0 }
  0xda   : > { %v581_v7 = vpop.f32.mrf.mxu1  ;;  %2518 = vmatmul.msk.bf16.vlgmr.msrb.gmra.mxu0 %vm450_vm0, %v3350_v5  ;;  %2598 = vmatmul.msk.bf16.vlgmr.msrb.gmra.mxu2 %vm450_vm0, %v3093_v44 }
  0xdd   : > { %2526 = vmatmul.msk.bf16.vlgmr.msrb.gmra.mxu1 %vm450_vm0, %v3350_v5  ;;  %2606 = vmatmul.msk.bf16.vlgmr.msrb.gmra.mxu3 %vm450_vm0, %v3093_v44  ;;  %v710_v15 = vpop.f32.mrf.mxu2  ;;  %v281_v44 = vld [vmem:[%s3953_s2 + $0x18] sm:$0xff] }
  0xde   : > { %v3367_v17 = vadd.f32 %v710_v15, %v532_v6  ;;  %1170 = vperm.xlu1 %2876, %v281_v44   ;;  %v285_v6 = vld [vmem:[%s3953_s2 + $0x38] sm:$0xff] }
  0xdf   : > { %v534_v21 = vpop.f32.mrf.mxu0 }
  0xe0   : > { %v759_v16 = vpop.f32.mrf.mxu3 }
  0xe1   : > { %v3369_v20 = vadd.f32 %v759_v16, %v581_v7  ;;  %v283_v16 = vld [vmem:[%s3953_s2 + $0x28] sm:$0xff] }
  0xe2   : > { %v583_v22 = vpop.f32.mrf.mxu1 }
  0xe5   : > { %v712_v23 = vpop.f32.mrf.mxu2 }
  0xe6   : > { %v3380_v26 = vadd.f32 %v712_v23, %v534_v21  ;;  %1190 = vperm.xlu1 %2876, %v285_v6   ;;  %v2801_v21 = vld [vmem:[%s3041_s30 + $0xb0] sm:$0xff] }
  0xe7   : > { %v537_v30 = vpop.f32.mrf.mxu0  ;;  %v1824_v44 = vsel %vm450_vm0, %v2801_v21, 0 }
  0xe8   : > { %v761_v24 = vpop.f32.mrf.mxu3  ;;  %1870 = vmatpush.bf16.xpose.msra.mxu2 %v1824_v44  ;;  %v290_v44 = vld [vmem:[%s3953_s2 + $0x60] sm:$0xff] }
  0xe9   : > { %v3382_v27 = vadd.f32 %v761_v24, %v583_v22  ;;  %v2809_v22 = vld [vmem:[%s3041_s30 + $0xf0] sm:$0xff] }
  0xea   : > { %v586_v31 = vpop.f32.mrf.mxu1  ;;  %2519 = vmatmul.msk.bf16.gmra.mxu0 %vm450_vm0, %v3378_v25  ;;  %2599 = vmatmul.msk.bf16.gmra.mxu2 %vm450_vm0, %v3136_v62  ;;  %v1848_v23 = vsel %vm450_vm0, %v2809_v22, 0 }
  0xeb   : > { %1919 = vmatpush.bf16.xpose.msra.mxu3 %v1848_v23  ;;  %v2799_v23 = vld [vmem:[%s3041_s30 + $0xa0] sm:$0xff] }
  0xed   : > { %2527 = vmatmul.msk.bf16.gmra.mxu1 %vm450_vm0, %v3378_v25  ;;  %2607 = vmatmul.msk.bf16.gmra.mxu3 %vm450_vm0, %v3136_v62  ;;  %v715_v35 = vpop.f32.mrf.mxu2 }
  0xee   : > { %v3397_v36 = vadd.f32 %v715_v35, %v537_v30 }
  0xef   : > { %v539_v41 = vpop.f32.mrf.mxu0 }
  0xf0   : > { %v764_v50 = vpop.f32.mrf.mxu3 }
  0xf1   : > { %v3399_v37 = vadd.f32 %v764_v50, %v586_v31  ;;  %v3469_v50 = vld [vmem:[%s3952_s1 + $0xa0] sm:$0xff] }
  0xf2   : > { %v588_v42 = vpop.f32.mrf.mxu1 }
  0xf3   : > { %1920 = vmatpush.bf16.xpose.msra.mxu3 %v1845_v56  ;;  %v3535_v56 = vld [vmem:[%s3952_s1 + $0xb0] sm:$0xff] }
  0xf5   : > { %v717_v43 = vpop.f32.mrf.mxu2 }
  0xf6   : > { %v3406_v46 = vadd.f32 %v717_v43, %v539_v41 }
  0xf7   : > { %v542_v49 = vpop.f32.mrf.mxu0 }
  0xf8   : > { %v766_v62 = vpop.f32.mrf.mxu3 }
  0xf9   : > { %v3408_v48 = vadd.f32 %v766_v62, %v588_v42 }
  0xfa   : > { %v591_v51 = vpop.f32.mrf.mxu1  ;;  %2520 = vmatmul.msk.bf16.gmra.mxu0 %vm450_vm0, %v3404_v45  ;;  %2600 = vmatmul.msk.bf16.gmra.mxu2 %vm450_vm0, %v3168_v8 }
  0xfd   : > { %2528 = vmatmul.msk.bf16.gmra.mxu1 %vm450_vm0, %v3404_v45  ;;  %2608 = vmatmul.msk.bf16.gmra.mxu3 %vm450_vm0, %v3168_v8  ;;  %v720_v61 = vpop.f32.mrf.mxu2  ;;  %v282_v8 = vld [vmem:[%s3953_s2 + $0x20] sm:$0xff] }
  0xfe   : > { %v3425_v1 = vadd.f32 %v720_v61, %v542_v49  ;;  %1175 = vperm.xlu2 %2877, %v282_v8   ;;  %v288_v49 = vld [vmem:[%s3953_s2 + $0x50] sm:$0xff]  ;;  %v2782_v8 = vld [vmem:[%s3041_s30 + $0x88] sm:$0xff] }
  0xff   : > { %v544_v3 = vpop.f32.mrf.mxu0  ;;  %1205 = vperm.xlu1 %2876, %v288_v49   ;;  %v1605_v6 = vsel %vm450_vm0, %v2782_v8, 0  ;;  %v2781_v49 = vld [vmem:[%s3041_s30 + $0x80] sm:$0xff]  ;;  %v289_v8 = vld [vmem:[%s3953_s2 + $0x58] sm:$0xff] }
 0x100   : > { %v769_v0 = vpop.f32.mrf.mxu3  ;;  %1613 = vmatpush.bf16.xpose.msra.mxu0 %v1605_v6 }
 0x101   : > { %v3427_v2 = vadd.f32 %v769_v0, %v591_v51  ;;  %v2800_v51 = vld [vmem:[%s3041_s30 + $0xa8] sm:$0xff] }
 0x102   : > { %v593_v4 = vpop.f32.mrf.mxu1  ;;  %v1821_v55 = vsel %vm450_vm0, %v2800_v51, 0  ;;  %v1602_v51 = vsel %vm450_vm0, %v2781_v49, 0 }
 0x103   : > { %1871 = vmatpush.bf16.xpose.msra.mxu2 %v1821_v55 }
 0x105   : > { %v722_v7 = vpop.f32.mrf.mxu2 }
 0x106   : > { %v3440_v12 = vadd.f32 %v722_v7, %v544_v3  ;;  %1180 = vperm.xlu2 %2877, %v283_v16  }
 0x107   : > { %v547_v14 = vpop.f32.mrf.mxu0 }
 0x108   : > { %v771_v10 = vpop.f32.mrf.mxu3  ;;  %1614 = vmatpush.bf16.xpose.msra.mxu0 %v1602_v51 }
 0x109   : > { %v3442_v13 = vadd.f32 %v771_v10, %v593_v4 }
 0x10a   : > { %v596_v15 = vpop.f32.mrf.mxu1  ;;  %2521 = vmatmul.msk.bf16.gmra.mxu0 %vm450_vm0, %v3438_v11  ;;  %2601 = vmatmul.msk.bf16.gmra.mxu2 %vm450_vm0, %v3200_v18 }
 0x10d   : > { %2529 = vmatmul.msk.bf16.gmra.mxu1 %vm450_vm0, %v3438_v11  ;;  %2609 = vmatmul.msk.bf16.gmra.mxu3 %vm450_vm0, %v3200_v18  ;;  %v725_v24 = vpop.f32.mrf.mxu2  ;;  %v287_v18 = vld [vmem:[%s3953_s2 + $0x48] sm:$0xff] }
 0x10e   : > { %v3459_v31 = vadd.f32 %v725_v24, %v547_v14  ;;  %1200 = vperm.xlu0 %2875, %v287_v18   ;;  %v3502_v14 = vld [vmem:[%s3952_s1 + $0xa8] sm:$0xff]  ;;  %v2807_v24 = vld [vmem:[%s3041_s30 + $0xe0] sm:$0xff]  ;;  %s2892_s30 = sshra.s32 %s2110_s10, 4  ;;  %s2893_s30 = int_to_ptr.hbm [resolvable:$true] %s2892_s30 }
 0x10f   : > { %v549_v32 = vpop.f32.mrf.mxu0  ;;  %s2894_s18 = scalar_lea.hbm %s2893_s30, 256  ;;  %p2899_p1 = scmp.lt.s32.totalorder %s2893_s30, %s3954_s3 }
 0x110   : > { %v774_v30 = vpop.f32.mrf.mxu3  ;;  %p2895_p12 = scmp.ne.s32.totalorder %s2893_s30, %s2894_s18  ;;  %p2900_p2 = scmp.lt.s32.totalorder %s2898_s23, %s2894_s18 }
 0x111   : > { %v3461_v40 = vadd.f32 %v774_v30, %v596_v15  ;;  %v1818_v30 = vsel %vm450_vm0, %v2799_v23, 0 }
 0x112   : > { %v598_v33 = vpop.f32.mrf.mxu1  ;;  %1872 = vmatpush.bf16.xpose.msra.mxu2 %v1818_v30  ;;  %v3562_v30 = vld [vmem:[%s3952_s1 + $0xb8] sm:$0xff]  ;;  %p2896_p13 = pnand %p2895_p12, %p3021_p4  ;;  %p2901_p3 = por %p2900_p2, %p2899_p1 }
 0x114   : > { %p2897_p0 = pneg %p2896_p13 }
 0x115   : > { %v727_v34 = vpop.f32.mrf.mxu2 }
 0x116   : > { %v3471_v41 = vadd.f32 %v727_v34, %v549_v32  ;;  %1215 = vperm.xlu0 %2875, %v290_v44   ;;  %v1842_v32 = vsel %vm450_vm0, %v2807_v24, 0  ;;  %v293_v44 = vld [vmem:[%s3953_s2 + $0x78] sm:$0xff]  ;;  %p2902_p5 = pnand %p2901_p3, %p2897_p0 }
 0x117   : > { %v552_v43 = vpop.f32.mrf.mxu0  ;;  %1921 = vmatpush.bf16.xpose.msra.mxu3 %v1842_v32 }
 0x118   : > { %v776_v35 = vpop.f32.mrf.mxu3 }
 0x119   : > { %v3473_v42 = vadd.f32 %v776_v35, %v598_v33 }
 0x11a   : > { %v601_v62 = vpop.f32.mrf.mxu1  ;;  %2522 = vmatmul.msk.bf16.gmra.mxu0 %vm450_vm0, %v3469_v50  ;;  %2602 = vmatmul.msk.bf16.gmra.mxu2 %vm450_vm0, %v3232_v28 }
 0x11d   : > { %2530 = vmatmul.msk.bf16.gmra.mxu1 %vm450_vm0, %v3469_v50  ;;  %2610 = vmatmul.msk.bf16.gmra.mxu3 %vm450_vm0, %v3232_v28  ;;  %v730_v57 = vpop.f32.mrf.mxu2  ;;  %v286_v28 = vld [vmem:[%s3953_s2 + $0x40] sm:$0xff] }
 0x11e   : > { %v3490_v61 = vadd.f32 %v730_v57, %v552_v43  ;;  %1195 = vperm.xlu2 %2877, %v286_v28   ;;  %1230 = vperm.xlu0 %2875, %v293_v44  }
 0x11f   : > { %v554_v3 = vpop.f32.mrf.mxu0 }
 0x120   : > { %v779_v60 = vpop.f32.mrf.mxu3 }
 0x121   : > { %v3492_v0 = vadd.f32 %v779_v60, %v601_v62 }
 0x122   : > { %v603_v4 = vpop.f32.mrf.mxu1 }
 0x125   : > { %v732_v7 = vpop.f32.mrf.mxu2 }
 0x126   : > { %v3504_v15 = vadd.f32 %v732_v7, %v554_v3  ;;  %1210 = vperm.xlu2 %2877, %v289_v8  }
 0x127   : > { %v557_v21 = vpop.f32.mrf.mxu0 }
 0x128   : > { %v781_v10 = vpop.f32.mrf.mxu3 }
 0x129   : > { %v3506_v16 = vadd.f32 %v781_v10, %v603_v4 }
 0x12a   : > { %v606_v22 = vpop.f32.mrf.mxu1  ;;  %2523 = vmatmul.msk.bf16.gmra.mxu0 %vm450_vm0, %v3502_v14  ;;  %2603 = vmatmul.msk.bf16.gmra.mxu2 %vm450_vm0, %v3264_v38 }
 0x12d   : > { %2531 = vmatmul.msk.bf16.gmra.mxu1 %vm450_vm0, %v3502_v14  ;;  %2611 = vmatmul.msk.bf16.gmra.mxu3 %vm450_vm0, %v3264_v38  ;;  %v735_v33 = vpop.f32.mrf.mxu2  ;;  %v291_v38 = vld [vmem:[%s3953_s2 + $0x68] sm:$0xff] }
 0x12e   : > { %v3523_v34 = vadd.f32 %v735_v33, %v557_v21  ;;  %1220 = vperm.xlu1 %2876, %v291_v38  }
 0x12f   : > { %v559_v43 = vpop.f32.mrf.mxu0 }
 0x130   : > { %v784_v18 = vpop.f32.mrf.mxu3 }
 0x131   : > { %v3525_v35 = vadd.f32 %v784_v18, %v606_v22 }
 0x132   : > { %v608_v62 = vpop.f32.mrf.mxu1 }
 0x135   : > { %v737_v54 = vpop.f32.mrf.mxu2 }
 0x136   : > { %v3537_v57 = vadd.f32 %v737_v54, %v559_v43 }
 0x137   : > { %v562_v3 = vpop.f32.mrf.mxu0 }
 0x138   : > { %v786_v55 = vpop.f32.mrf.mxu3 }
 0x139   : > { %v3539_v60 = vadd.f32 %v786_v55, %v608_v62  ;;  %v292_v55 = vld [vmem:[%s3953_s2 + $0x70] sm:$0xff] }
 0x13a   : > { %v611_v4 = vpop.f32.mrf.mxu1  ;;  %2524 = vmatmul.msk.bf16.gmra.mxu0 %vm450_vm0, %v3535_v56  ;;  %2604 = vmatmul.msk.bf16.gmra.mxu2 %vm450_vm0, %v3292_v52 }
 0x13b   : > { %1225 = vperm.xlu2 %2877, %v292_v55  }
 0x13d   : > { %2532 = vmatmul.msk.bf16.gmra.mxu1 %vm450_vm0, %v3535_v56  ;;  %2612 = vmatmul.msk.bf16.gmra.mxu3 %vm450_vm0, %v3292_v52  ;;  %v740_v28 = vpop.f32.mrf.mxu2 }
 0x13e   : > { %v3552_v7 = vadd.f32 %v740_v28, %v562_v3  ;;  %v3583_v3 = vpop.permute.xlu0 %1155 }
 0x13f   : > { %v564_v21 = vpop.f32.mrf.mxu0 }
 0x140   : > { %v789_v6 = vpop.f32.mrf.mxu3 }
 0x141   : > { %v3554_v10 = vadd.f32 %v789_v6, %v611_v4 }
 0x142   : > { %v613_v22 = vpop.f32.mrf.mxu1 }
 0x145   : > { %v742_v23 = vpop.f32.mrf.mxu2 }
 0x146   : > { %v3564_v52 = vadd.f32 %v742_v23, %v564_v21 }
 0x147   : > { %v567_v33 = vpop.f32.mrf.mxu0 }
 0x148   : > { %v791_v24 = vpop.f32.mrf.mxu3 }
 0x149   : > { %v3566_v32 = vadd.f32 %v791_v24, %v613_v22 }
 0x14a   : > { %v616_v18 = vpop.f32.mrf.mxu1  ;;  %2525 = vmatmul.msk.bf16.gmra.mxu0 %vm450_vm0, %v3562_v30  ;;  %2605 = vmatmul.msk.bf16.gmra.mxu2 %vm450_vm0, %v3318_v58 }
 0x14d   : > { %2533 = vmatmul.msk.bf16.gmra.mxu1 %vm450_vm0, %v3562_v30  ;;  %2613 = vmatmul.msk.bf16.gmra.mxu3 %vm450_vm0, %v3318_v58  ;;  %v745_v43 = vpop.f32.mrf.mxu2 }
 0x14e   : > { %v3576_v49 = vadd.f32 %v745_v43, %v567_v33  ;;  %v3604_v33 = vpop.permute.xlu0 %1160 }
 0x14f   : > { %v569_v51 = vpop.f32.mrf.mxu0 }
 0x150   : > { %v794_v62 = vpop.f32.mrf.mxu3 }
 0x151   : > { %v3578_v38 = vadd.f32 %v794_v62, %v616_v18 }
 0x152   : > { %v618_v54 = vpop.f32.mrf.mxu1 }
 0x155   : > { %v747_v4 = vpop.f32.mrf.mxu2 }
 0x156   : > { %v3585_v58 = vadd.f32 %v747_v4, %v569_v51 }
 0x157   : > { %v1032_v6 = vpop.f32.mrf.mxu0 }
 0x158   : > { %v796_v8 = vpop.f32.mrf.mxu3  ;;  %v1121_v22 = vadd.f32 %v1032_v6, %v3367_v17 }
 0x159   : > { %v3587_v28 = vadd.f32 %v796_v8, %v618_v54  ;;  %v3617_v8 = vpop.permute.xlu1 %1165 }
 0x15a   : > { %v1081_v21 = vpop.f32.mrf.mxu1  ;;  %v1233_v23 = vadd.f32 %v3583_v3, %v1121_v22  ;;  %2622 = vmatmul.msk.bf16.vlgmr.msra.gmra.mxu0 %vm450_vm0, %v3100_v47  ;;  %2702 = vmatmul.msk.bf16.vlgmr.msra.gmra.mxu2 %vm450_vm0, %v3350_v5 }
 0x15b   : > { %v1122_v44 = vadd.f32 %v1081_v21, %v3369_v20 }
 0x15c   : > { %v1265_v17 = vmax.f32 %v1233_v23, 0.0 }
 0x15d   : > { %v1234_v24 = vadd.f32 %v3583_v3, %v1122_v44  ;;  %2630 = vmatmul.msk.bf16.vlgmr.msra.gmra.mxu1 %vm450_vm0, %v3100_v47  ;;  %2710 = vmatmul.msk.bf16.vlgmr.msra.gmra.mxu3 %vm450_vm0, %v3350_v5  ;;  %v3606_v43 = vpop.f32.mrf.mxu2 }
 0x15f   : > { %v1266_v20 = vmax.f32 %v1234_v24, 0.0  ;;  %v1034_v51 = vpop.f32.mrf.mxu0 }
 0x160   : > { %v3608_v62 = vpop.f32.mrf.mxu3  ;;  %v1123_v47 = vadd.f32 %v1034_v51, %v3380_v26 }
 0x161   : > { %v1297_v18 = vpack.c.bf16 %v1266_v20, %v1265_v17 }
 0x162   : > { %v1083_v54 = vpop.f32.mrf.mxu1  ;;  %v1235_v55 = vadd.f32 %v3604_v33, %v1123_v47 }
 0x163   : > { %1313 = vst [vmem:[%s3610_s5] sm:$0xff] %v1297_v18  ;;  %v1124_v5 = vadd.f32 %v1083_v54, %v3382_v27  ;;  %v3636_v54 = vpop.permute.xlu1 %1170 }
 0x164   : > { %v1267_v6 = vmax.f32 %v1235_v55, 0.0 }
 0x165   : > { %v1236_v4 = vadd.f32 %v3604_v33, %v1124_v5  ;;  %v3619_v44 = vpop.f32.mrf.mxu2 }
 0x167   : > { %v1268_v21 = vmax.f32 %v1236_v4, 0.0  ;;  %v1037_v24 = vpop.f32.mrf.mxu0 }
 0x168   : > { %v3621_v23 = vpop.f32.mrf.mxu3  ;;  %v1125_v26 = vadd.f32 %v1037_v24, %v3397_v36 }
 0x169   : > { %v1298_v22 = vpack.c.bf16 %v1268_v21, %v1267_v6 }
 0x16a   : > { %v1086_v17 = vpop.f32.mrf.mxu1  ;;  %v1237_v20 = vadd.f32 %v3617_v8, %v1125_v26  ;;  %2623 = vmatmul.msk.bf16.gmra.mxu0 %vm450_vm0, %v3141_v63  ;;  %2703 = vmatmul.msk.bf16.gmra.mxu2 %vm450_vm0, %v3378_v25 }
 0x16b   : > { %1314 = vst [vmem:[%s3610_s5 + $0x10] sm:$0xff] %v1298_v22  ;;  %v1126_v27 = vadd.f32 %v1086_v17, %v3399_v37  ;;  %v3647_v22 = vpop.permute.xlu2 %1175 }
 0x16c   : > { %v1269_v36 = vmax.f32 %v1237_v20, 0.0 }
 0x16d   : > { %v1238_v18 = vadd.f32 %v3617_v8, %v1126_v27  ;;  %2631 = vmatmul.msk.bf16.gmra.mxu1 %vm450_vm0, %v3141_v63  ;;  %2711 = vmatmul.msk.bf16.gmra.mxu3 %vm450_vm0, %v3378_v25  ;;  %v3638_v47 = vpop.f32.mrf.mxu2 }
 0x16f   : > { %v1270_v51 = vmax.f32 %v1238_v18, 0.0  ;;  %v1039_v55 = vpop.f32.mrf.mxu0 }
 0x170   : > { %v3640_v5 = vpop.f32.mrf.mxu3  ;;  %v1127_v63 = vadd.f32 %v1039_v55, %v3406_v46 }
 0x171   : > { %v1299_v37 = vpack.c.bf16 %v1270_v51, %v1269_v36 }
 0x172   : > { %v1088_v4 = vpop.f32.mrf.mxu1  ;;  %v1239_v21 = vadd.f32 %v3636_v54, %v1127_v63 }
 0x173   : > { %1315 = vst [vmem:[%s3610_s5 + $0x20] sm:$0xff] %v1299_v37  ;;  %v1128_v6 = vadd.f32 %v1088_v4, %v3408_v48  ;;  %v3666_v4 = vpop.permute.xlu2 %1180 }
 0x174   : > { %v1271_v24 = vmax.f32 %v1239_v21, 0.0 }
 0x175   : > { %v1240_v25 = vadd.f32 %v3636_v54, %v1128_v6  ;;  %v3649_v27 = vpop.f32.mrf.mxu2 }
 0x177   : > { %v1272_v17 = vmax.f32 %v1240_v25, 0.0  ;;  %v1042_v18 = vpop.f32.mrf.mxu0 }
 0x178   : > { %v3651_v20 = vpop.f32.mrf.mxu3  ;;  %v1129_v46 = vadd.f32 %v1042_v18, %v3425_v1 }
 0x179   : > { %v1300_v26 = vpack.c.bf16 %v1272_v17, %v1271_v24 }
 0x17a   : > { %v1091_v36 = vpop.f32.mrf.mxu1  ;;  %v1241_v51 = vadd.f32 %v3647_v22, %v1129_v46  ;;  %2624 = vmatmul.msk.bf16.gmra.mxu0 %vm450_vm0, %v3173_v9  ;;  %2704 = vmatmul.msk.bf16.gmra.mxu2 %vm450_vm0, %v3404_v45 }
 0x17b   : > { %1316 = vst [vmem:[%s3610_s5 + $0x30] sm:$0xff] %v1300_v26  ;;  %v1130_v48 = vadd.f32 %v1091_v36, %v3427_v2  ;;  %v3677_v36 = vpop.permute.xlu0 %1185 }
 0x17c   : > { %v1273_v1 = vmax.f32 %v1241_v51, 0.0 }
 0x17d   : > { %v1242_v37 = vadd.f32 %v3647_v22, %v1130_v48  ;;  %2632 = vmatmul.msk.bf16.gmra.mxu1 %vm450_vm0, %v3173_v9  ;;  %2712 = vmatmul.msk.bf16.gmra.mxu3 %vm450_vm0, %v3404_v45  ;;  %v3668_v63 = vpop.f32.mrf.mxu2 }
 0x17f   : > { %v1274_v55 = vmax.f32 %v1242_v37, 0.0  ;;  %v1044_v21 = vpop.f32.mrf.mxu0 }
 0x180   : > { %v3670_v6 = vpop.f32.mrf.mxu3  ;;  %v1131_v9 = vadd.f32 %v1044_v21, %v3440_v12 }
 0x181   : > { %v1301_v2 = vpack.c.bf16 %v1274_v55, %v1273_v1 }
 0x182   : > { %v1093_v25 = vpop.f32.mrf.mxu1  ;;  %v1243_v17 = vadd.f32 %v3666_v4, %v1131_v9 }
 0x183   : > { %1317 = vst [vmem:[%s3610_s5 + $0x40] sm:$0xff] %v1301_v2  ;;  %v1132_v24 = vadd.f32 %v1093_v25, %v3442_v13  ;;  %v3696_v25 = vpop.permute.xlu1 %1190 }
 0x184   : > { %v1275_v26 = vmax.f32 %v1243_v17, 0.0 }
 0x185   : > { %v1244_v45 = vadd.f32 %v3666_v4, %v1132_v24  ;;  %v3679_v48 = vpop.f32.mrf.mxu2 }
 0x187   : > { %v1276_v18 = vmax.f32 %v1244_v45, 0.0  ;;  %v1047_v37 = vpop.f32.mrf.mxu0 }
 0x188   : > { %v3681_v51 = vpop.f32.mrf.mxu3  ;;  %v1133_v12 = vadd.f32 %v1047_v37, %v3459_v31 }
 0x189   : > { %v1302_v46 = vpack.c.bf16 %v1276_v18, %v1275_v26 }
 0x18a   : > { %v1096_v1 = vpop.f32.mrf.mxu1  ;;  %v1245_v55 = vadd.f32 %v3677_v36, %v1133_v12  ;;  %2625 = vmatmul.msk.bf16.gmra.mxu0 %vm450_vm0, %v3205_v19  ;;  %2705 = vmatmul.msk.bf16.gmra.mxu2 %vm450_vm0, %v3438_v11 }
 0x18b   : > { %1318 = vst [vmem:[%s3610_s5 + $0x50] sm:$0xff] %v1302_v46  ;;  %v1134_v13 = vadd.f32 %v1096_v1, %v3461_v40  ;;  %v3707_v1 = vpop.permute.xlu2 %1195 }
 0x18c   : > { %v1277_v31 = vmax.f32 %v1245_v55, 0.0 }
 0x18d   : > { %v1246_v2 = vadd.f32 %v3677_v36, %v1134_v13  ;;  %2633 = vmatmul.msk.bf16.gmra.mxu1 %vm450_vm0, %v3205_v19  ;;  %2713 = vmatmul.msk.bf16.gmra.mxu3 %vm450_vm0, %v3438_v11  ;;  %v3698_v9 = vpop.f32.mrf.mxu2 }
 0x18f   : > { %v1278_v21 = vmax.f32 %v1246_v2, 0.0  ;;  %v1049_v17 = vpop.f32.mrf.mxu0 }
 0x190   : > { %v3700_v24 = vpop.f32.mrf.mxu3  ;;  %v1135_v19 = vadd.f32 %v1049_v17, %v3471_v41 }
 0x191   : > { %v1303_v40 = vpack.c.bf16 %v1278_v21, %v1277_v31 }
 0x192   : > { %v1098_v45 = vpop.f32.mrf.mxu1  ;;  %v1247_v18 = vadd.f32 %v3696_v25, %v1135_v19 }
 0x193   : > { %1319 = vst [vmem:[%s3610_s5 + $0x60] sm:$0xff] %v1303_v40  ;;  %v1136_v26 = vadd.f32 %v1098_v45, %v3473_v42  ;;  %v3726_v45 = vpop.permute.xlu0 %1200 }
 0x194   : > { %v1279_v46 = vmax.f32 %v1247_v18, 0.0 }
 0x195   : > { %v1248_v11 = vadd.f32 %v3696_v25, %v1136_v26  ;;  %v3709_v13 = vpop.f32.mrf.mxu2 }
 0x197   : > { %v1280_v37 = vmax.f32 %v1248_v11, 0.0  ;;  %v1052_v2 = vpop.f32.mrf.mxu0 }
 0x198   : > { %v3711_v55 = vpop.f32.mrf.mxu3  ;;  %v1137_v41 = vadd.f32 %v1052_v2, %v3490_v61 }
 0x199   : > { %v1304_v12 = vpack.c.bf16 %v1280_v37, %v1279_v46 }
 0x19a   : > { %v1101_v31 = vpop.f32.mrf.mxu1  ;;  %v1249_v21 = vadd.f32 %v3707_v1, %v1137_v41  ;;  %2626 = vmatmul.msk.bf16.gmra.mxu0 %vm450_vm0, %v3237_v29  ;;  %2706 = vmatmul.msk.bf16.gmra.mxu2 %vm450_vm0, %v3469_v50 }
 0x19b   : > { %1320 = vst [vmem:[%s3610_s5 + $0x70] sm:$0xff] %v1304_v12  ;;  %v1138_v42 = vadd.f32 %v1101_v31, %v3492_v0  ;;  %v3737_v31 = vpop.permute.xlu1 %1205 }
 0x19c   : > { %v1281_v61 = vmax.f32 %v1249_v21, 0.0 }
 0x19d   : > { %v1250_v40 = vadd.f32 %v3707_v1, %v1138_v42  ;;  %2634 = vmatmul.msk.bf16.gmra.mxu1 %vm450_vm0, %v3237_v29  ;;  %2714 = vmatmul.msk.bf16.gmra.mxu3 %vm450_vm0, %v3469_v50  ;;  %v3728_v19 = vpop.f32.mrf.mxu2 }
 0x19f   : > { %v1282_v17 = vmax.f32 %v1250_v40, 0.0  ;;  %v1054_v18 = vpop.f32.mrf.mxu0 }
 0x1a0   : > { %v3730_v26 = vpop.f32.mrf.mxu3  ;;  %v1139_v29 = vadd.f32 %v1054_v18, %v3504_v15 }
 0x1a1   : > { %v1305_v0 = vpack.c.bf16 %v1282_v17, %v1281_v61 }
 0x1a2   : > { %v1103_v11 = vpop.f32.mrf.mxu1  ;;  %v1251_v37 = vadd.f32 %v3726_v45, %v1139_v29 }
 0x1a3   : > { %1321 = vst [vmem:[%s3610_s5 + $0x80] sm:$0xff] %v1305_v0  ;;  %v1140_v46 = vadd.f32 %v1103_v11, %v3506_v16  ;;  %v3756_v11 = vpop.permute.xlu2 %1210 }
 0x1a4   : > { %v1283_v12 = vmax.f32 %v1251_v37, 0.0 }
 0x1a5   : > { %v1252_v50 = vadd.f32 %v3726_v45, %v1140_v46  ;;  %v3739_v42 = vpop.f32.mrf.mxu2 }
 0x1a7   : > { %v1284_v2 = vmax.f32 %v1252_v50, 0.0  ;;  %v1057_v40 = vpop.f32.mrf.mxu0 }
 0x1a8   : > { %v3741_v21 = vpop.f32.mrf.mxu3  ;;  %v1141_v15 = vadd.f32 %v1057_v40, %v3523_v34 }
 0x1a9   : > { %v1306_v41 = vpack.c.bf16 %v1284_v2, %v1283_v12 }
 0x1aa   : > { %v1106_v61 = vpop.f32.mrf.mxu1  ;;  %v1253_v17 = vadd.f32 %v3737_v31, %v1141_v15  ;;  %2627 = vmatmul.msk.bf16.gmra.mxu0 %vm450_vm0, %v3269_v39  ;;  %2707 = vmatmul.msk.bf16.gmra.mxu2 %vm450_vm0, %v3502_v14 }
 0x1ab   : > { %1322 = vst [vmem:[%s3610_s5 + $0x90] sm:$0xff] %v1306_v41  ;;  %v1142_v16 = vadd.f32 %v1106_v61, %v3525_v35  ;;  %v3767_v61 = vpop.permute.xlu0 %1215 }
 0x1ac   : > { %v1285_v34 = vmax.f32 %v1253_v17, 0.0 }
 0x1ad   : > { %v1254_v0 = vadd.f32 %v3737_v31, %v1142_v16  ;;  %2635 = vmatmul.msk.bf16.gmra.mxu1 %vm450_vm0, %v3269_v39  ;;  %2715 = vmatmul.msk.bf16.gmra.mxu3 %vm450_vm0, %v3502_v14  ;;  %v3758_v29 = vpop.f32.mrf.mxu2 }
 0x1af   : > { %v1286_v18 = vmax.f32 %v1254_v0, 0.0  ;;  %v1059_v37 = vpop.f32.mrf.mxu0 }
 0x1b0   : > { %v3760_v46 = vpop.f32.mrf.mxu3  ;;  %v1143_v39 = vadd.f32 %v1059_v37, %v3537_v57 }
 0x1b1   : > { %v1307_v35 = vpack.c.bf16 %v1286_v18, %v1285_v34 }
 0x1b2   : > { %v1108_v50 = vpop.f32.mrf.mxu1  ;;  %v1255_v2 = vadd.f32 %v3756_v11, %v1143_v39 }
 0x1b3   : > { %1323 = vst [vmem:[%s3610_s5 + $0xa0] sm:$0xff] %v1307_v35  ;;  %v1144_v12 = vadd.f32 %v1108_v50, %v3539_v60  ;;  %v3786_v50 = vpop.permute.xlu1 %1220 }
 0x1b4   : > { %v1287_v41 = vmax.f32 %v1255_v2, 0.0 }
 0x1b5   : > { %v1256_v14 = vadd.f32 %v3756_v11, %v1144_v12  ;;  %v3769_v16 = vpop.f32.mrf.mxu2 }
 0x1b7   : > { %v1288_v40 = vmax.f32 %v1256_v14, 0.0  ;;  %v1062_v0 = vpop.f32.mrf.mxu0 }
 0x1b8   : > { %v3771_v17 = vpop.f32.mrf.mxu3  ;;  %v1145_v57 = vadd.f32 %v1062_v0, %v3552_v7 }
 0x1b9   : > { %v1308_v15 = vpack.c.bf16 %v1288_v40, %v1287_v41 }
 0x1ba   : > { %v1111_v34 = vpop.f32.mrf.mxu1  ;;  %v1257_v18 = vadd.f32 %v3767_v61, %v1145_v57  ;;  %2628 = vmatmul.msk.bf16.gmra.mxu0 %vm450_vm0, %v3297_v53  ;;  %2708 = vmatmul.msk.bf16.gmra.mxu2 %vm450_vm0, %v3535_v56 }
 0x1bb   : > { %1324 = vst [vmem:[%s3610_s5 + $0xb0] sm:$0xff] %v1308_v15  ;;  %v1146_v60 = vadd.f32 %v1111_v34, %v3554_v10  ;;  %v3797_v34 = vpop.permute.xlu2 %1225 }
 0x1bc   : > { %v1289_v7 = vmax.f32 %v1257_v18, 0.0 }
 0x1bd   : > { %v1258_v35 = vadd.f32 %v3767_v61, %v1146_v60  ;;  %2636 = vmatmul.msk.bf16.gmra.mxu1 %vm450_vm0, %v3297_v53  ;;  %2716 = vmatmul.msk.bf16.gmra.mxu3 %vm450_vm0, %v3535_v56  ;;  %v3788_v39 = vpop.f32.mrf.mxu2 }
 0x1bf   : > { %v1290_v37 = vmax.f32 %v1258_v35, 0.0  ;;  %v1064_v2 = vpop.f32.mrf.mxu0 }
 0x1c0   : > { %v3790_v12 = vpop.f32.mrf.mxu3  ;;  %v1147_v53 = vadd.f32 %v1064_v2, %v3564_v52 }
 0x1c1   : > { %v1309_v10 = vpack.c.bf16 %v1290_v37, %v1289_v7 }
 0x1c2   : > { %v1113_v14 = vpop.f32.mrf.mxu1  ;;  %v1259_v40 = vadd.f32 %v3786_v50, %v1147_v53 }
 0x1c3   : > { %1325 = vst [vmem:[%s3610_s5 + $0xc0] sm:$0xff] %v1309_v10  ;;  %v1148_v41 = vadd.f32 %v1113_v14, %v3566_v32  ;;  %v3816_v14 = vpop.permute.xlu0 %1230 }
 0x1c4   : > { %v1291_v15 = vmax.f32 %v1259_v40, 0.0 }
 0x1c5   : > { %v1260_v56 = vadd.f32 %v3786_v50, %v1148_v41  ;;  %v3799_v60 = vpop.f32.mrf.mxu2 }
 0x1c7   : > { %v1292_v0 = vmax.f32 %v1260_v56, 0.0  ;;  %v1067_v35 = vpop.f32.mrf.mxu0 }
 0x1c8   : > { %v3801_v18 = vpop.f32.mrf.mxu3  ;;  %v1149_v52 = vadd.f32 %v1067_v35, %v3576_v49 }
 0x1c9   : > { %v1310_v57 = vpack.c.bf16 %v1292_v0, %v1291_v15 }
 0x1ca   : > { %v1116_v7 = vpop.f32.mrf.mxu1  ;;  %v1261_v37 = vadd.f32 %v3797_v34, %v1149_v52  ;;  %2629 = vmatmul.msk.bf16.gmra.mxu0 %vm450_vm0, %v3323_v59  ;;  %2709 = vmatmul.msk.bf16.gmra.mxu2 %vm450_vm0, %v3562_v30 }
 0x1cb   : > { %1326 = vst [vmem:[%s3610_s5 + $0xd0] sm:$0xff] %v1310_v57  ;;  %v1150_v32 = vadd.f32 %v1116_v7, %v3578_v38 }
 0x1cc   : > { %v1293_v49 = vmax.f32 %v1261_v37, 0.0 }
 0x1cd   : > { %v1262_v10 = vadd.f32 %v3797_v34, %v1150_v32  ;;  %2637 = vmatmul.msk.bf16.gmra.mxu1 %vm450_vm0, %v3323_v59  ;;  %2717 = vmatmul.msk.bf16.gmra.mxu3 %vm450_vm0, %v3562_v30  ;;  %v3818_v53 = vpop.f32.mrf.mxu2 }
 0x1cf   : > { %v1294_v2 = vmax.f32 %v1262_v10, 0.0  ;;  %v1069_v40 = vpop.f32.mrf.mxu0 }
 0x1d0   : > { %v3820_v41 = vpop.f32.mrf.mxu3  ;;  %v1151_v59 = vadd.f32 %v1069_v40, %v3585_v58 }
 0x1d1   : > { %v1311_v38 = vpack.c.bf16 %v1294_v2, %v1293_v49 }
 0x1d2   : > { %v1118_v56 = vpop.f32.mrf.mxu1  ;;  %v1263_v0 = vadd.f32 %v3816_v14, %v1151_v59 }
 0x1d3   : > { %1327 = vst [vmem:[%s3610_s5 + $0xe0] sm:$0xff] %v1311_v38  ;;  %v1152_v15 = vadd.f32 %v1118_v56, %v3587_v28 }
 0x1d4   : > { %v1295_v57 = vmax.f32 %v1263_v0, 0.0 }
 0x1d5   : > { %v1264_v30 = vadd.f32 %v3816_v14, %v1152_v15  ;;  %v3827_v52 = vpop.f32.mrf.mxu2 }
 0x1d7   : > { %v1296_v35 = vmax.f32 %v1264_v30, 0.0  ;;  %v1616_v37 = vpop.f32.mrf.mxu0 }
 0x1d8   : > { %v3829_v32 = vpop.f32.mrf.mxu3  ;;  %v1617_v49 = vadd.f32 %v1616_v37, %v3606_v43 }
 0x1d9   : > { %v1312_v7 = vpack.c.bf16 %v1296_v35, %v1295_v57 }
 0x1da   : > { %v1665_v10 = vpop.f32.mrf.mxu1 }
 0x1db   : > { %1328 = vst [vmem:[%s3610_s5 + $0xf0] sm:$0xff] %v1312_v7  ;;  %v1666_v58 = vadd.f32 %v1665_v10, %v3608_v62 }
 0x1dd   : > { %v1874_v28 = vpop.f32.mrf.mxu2 }
 0x1de   : > { %v1963_v38 = vadd.f32 %v1874_v28, %v1617_v49 }
 0x1df   : > { %v1618_v56 = vpop.f32.mrf.mxu0 }
 0x1e0   : > { %v1923_v2 = vpop.f32.mrf.mxu3  ;;  %v1995_v15 = vadd.f32 %v1963_v38, %v3583_v3  ;;  %v1619_v7 = vadd.f32 %v1618_v56, %v3619_v44 }
 0x1e1   : > { %v1964_v40 = vadd.f32 %v1923_v2, %v1666_v58 }
 0x1e2   : > { %v1667_v59 = vpop.f32.mrf.mxu1  ;;  %v2027_v30 = vmax.f32 %v1995_v15, 0.0 }
 0x1e3   : > { %v1996_v0 = vadd.f32 %v1964_v40, %v3583_v3  ;;  %v1668_v43 = vadd.f32 %v1667_v59, %v3621_v23 }
 0x1e5   : > { %v2028_v57 = vmax.f32 %v1996_v0, 0.0  ;;  %v1876_v37 = vpop.f32.mrf.mxu2 }
 0x1e6   : > { %v1965_v10 = vadd.f32 %v1876_v37, %v1619_v7 }
 0x1e7   : > { %v2059_v35 = vpack.c.bf16 %v2028_v57, %v2027_v30  ;;  %v1621_v58 = vpop.f32.mrf.mxu0 }
 0x1e8   : > { %v1925_v62 = vpop.f32.mrf.mxu3  ;;  %v1997_v2 = vadd.f32 %v1965_v10, %v3604_v33  ;;  %v1622_v0 = vadd.f32 %v1621_v58, %v3638_v47 }
 0x1e9   : > { %2075 = vst [vmem:[%s3610_s5 + $0x8] sm:$0xff] %v2059_v35  ;;  %v1966_v49 = vadd.f32 %v1925_v62, %v1668_v43 }
 0x1ea   : > { %v1670_v28 = vpop.f32.mrf.mxu1  ;;  %v2029_v3 = vmax.f32 %v1997_v2, 0.0 }
 0x1eb   : > { %v1998_v38 = vadd.f32 %v1966_v49, %v3604_v33  ;;  %v1671_v44 = vadd.f32 %v1670_v28, %v3640_v5 }
 0x1ed   : > { %v2030_v40 = vmax.f32 %v1998_v38, 0.0  ;;  %v1879_v23 = vpop.f32.mrf.mxu2 }
 0x1ee   : > { %v1967_v59 = vadd.f32 %v1879_v23, %v1622_v0 }
 0x1ef   : > { %v2060_v15 = vpack.c.bf16 %v2030_v40, %v2029_v3  ;;  %v1623_v57 = vpop.f32.mrf.mxu0 }
 0x1f0   : > { %v1928_v56 = vpop.f32.mrf.mxu3  ;;  %v1999_v7 = vadd.f32 %v1967_v59, %v3617_v8  ;;  %v1624_v10 = vadd.f32 %v1623_v57, %v3649_v27 }
 0x1f1   : > { %2076 = vst [vmem:[%s3610_s5 + $0x18] sm:$0xff] %v2060_v15  ;;  %v1968_v30 = vadd.f32 %v1928_v56, %v1671_v44 }
 0x1f2   : > { %v1672_v35 = vpop.f32.mrf.mxu1  ;;  %v2031_v33 = vmax.f32 %v1999_v7, 0.0 }
 0x1f3   : > { %v2000_v43 = vadd.f32 %v1968_v30, %v3617_v8  ;;  %v1673_v47 = vadd.f32 %v1672_v35, %v3651_v20 }
 0x1f5   : > { %v2032_v37 = vmax.f32 %v2000_v43, 0.0  ;;  %v1881_v5 = vpop.f32.mrf.mxu2 }
 0x1f6   : > { %v1969_v58 = vadd.f32 %v1881_v5, %v1624_v10 }
 0x1f7   : > { %v2061_v62 = vpack.c.bf16 %v2032_v37, %v2031_v33  ;;  %v1626_v2 = vpop.f32.mrf.mxu0 }
 0x1f8   : > { %v1930_v49 = vpop.f32.mrf.mxu3  ;;  %v2001_v3 = vadd.f32 %v1969_v58, %v3636_v54  ;;  %v1627_v44 = vadd.f32 %v1626_v2, %v3668_v63 }
 0x1f9   : > { %2077 = vst [vmem:[%s3610_s5 + $0x28] sm:$0xff] %v2061_v62  ;;  %v1970_v28 = vadd.f32 %v1930_v49, %v1673_v47 }
 0x1fa   : > { %v1675_v38 = vpop.f32.mrf.mxu1  ;;  %v2033_v8 = vmax.f32 %v2001_v3, 0.0 }
 0x1fb   : > { %v2002_v40 = vadd.f32 %v1970_v28, %v3636_v54  ;;  %v1676_v27 = vadd.f32 %v1675_v38, %v3670_v6 }
 0x1fd   : > { %v2034_v15 = vmax.f32 %v2002_v40, 0.0  ;;  %v1884_v20 = vpop.f32.mrf.mxu2 }
 0x1fe   : > { %v1971_v56 = vadd.f32 %v1884_v20, %v1627_v44 }
 0x1ff   : > { %v2062_v0 = vpack.c.bf16 %v2034_v15, %v2033_v8  ;;  %v1628_v30 = vpop.f32.mrf.mxu0 }
 0x200   : > { %v1933_v23 = vpop.f32.mrf.mxu3  ;;  %v2003_v35 = vadd.f32 %v1971_v56, %v3647_v22  ;;  %v1629_v37 = vadd.f32 %v1628_v30, %v3679_v48 }
 0x201   : > { %2078 = vst [vmem:[%s3610_s5 + $0x38] sm:$0xff] %v2062_v0  ;;  %v1972_v59 = vadd.f32 %v1933_v23, %v1676_v27 }
 0x202   : > { %v1677_v57 = vpop.f32.mrf.mxu1  ;;  %v2035_v54 = vmax.f32 %v2003_v35, 0.0 }
 0x203   : > { %v2004_v7 = vadd.f32 %v1972_v59, %v3647_v22  ;;  %v1678_v63 = vadd.f32 %v1677_v57, %v3681_v51 }
 0x205   : > { %v2036_v43 = vmax.f32 %v2004_v7, 0.0  ;;  %v1886_v6 = vpop.f32.mrf.mxu2 }
 0x206   : > { %v1973_v10 = vadd.f32 %v1886_v6, %v1629_v37 }
 0x207   : > { %v2063_v33 = vpack.c.bf16 %v2036_v43, %v2035_v54  ;;  %v1631_v5 = vpop.f32.mrf.mxu0 }
 0x208   : > { %v1935_v62 = vpop.f32.mrf.mxu3  ;;  %v2005_v58 = vadd.f32 %v1973_v10, %v3666_v4  ;;  %v1632_v3 = vadd.f32 %v1631_v5, %v3698_v9 }
 0x209   : > { %2079 = vst [vmem:[%s3610_s5 + $0x48] sm:$0xff] %v2063_v33  ;;  %v1974_v47 = vadd.f32 %v1935_v62, %v1678_v63 }
 0x20a   : > { %v1680_v49 = vpop.f32.mrf.mxu1  ;;  %v2037_v22 = vmax.f32 %v2005_v58, 0.0 }
 0x20b   : > { %v2006_v28 = vadd.f32 %v1974_v47, %v3666_v4  ;;  %v1681_v48 = vadd.f32 %v1680_v49, %v3700_v24 }
 0x20d   : > { %v2038_v2 = vmax.f32 %v2006_v28, 0.0  ;;  %v1889_v51 = vpop.f32.mrf.mxu2 }
 0x20e   : > { %v1975_v8 = vadd.f32 %v1889_v51, %v1632_v3 }
 0x20f   : > { %v2064_v38 = vpack.c.bf16 %v2038_v2, %v2037_v22  ;;  %v1633_v0 = vpop.f32.mrf.mxu0 }
 0x210   : > { %v1938_v40 = vpop.f32.mrf.mxu3  ;;  %v2007_v27 = vadd.f32 %v1975_v8, %v3677_v36  ;;  %v1634_v59 = vadd.f32 %v1633_v0, %v3709_v13 }
 0x211   : > { %2080 = vst [vmem:[%s3610_s5 + $0x58] sm:$0xff] %v2064_v38  ;;  %v1976_v15 = vadd.f32 %v1938_v40, %v1681_v48 }
 0x212   : > { %v1682_v44 = vpop.f32.mrf.mxu1  ;;  %v2039_v4 = vmax.f32 %v2007_v27, 0.0 }
 0x213   : > { %v2008_v20 = vadd.f32 %v1976_v15, %v3677_v36  ;;  %v1683_v9 = vadd.f32 %v1682_v44, %v3711_v55 }
 0x215   : > { %v2040_v23 = vmax.f32 %v2008_v20, 0.0  ;;  %v1891_v24 = vpop.f32.mrf.mxu2 }
 0x216   : > { %v1977_v57 = vadd.f32 %v1891_v24, %v1634_v59 }
 0x217   : > { %v2065_v56 = vpack.c.bf16 %v2040_v23, %v2039_v4  ;;  %v1636_v7 = vpop.f32.mrf.mxu0 }
 0x218   : > { %v1940_v30 = vpop.f32.mrf.mxu3  ;;  %v2009_v43 = vadd.f32 %v1977_v57, %v3696_v25  ;;  %v1637_v6 = vadd.f32 %v1636_v7, %v3728_v19 }
 0x219   : > { %2081 = vst [vmem:[%s3610_s5 + $0x68] sm:$0xff] %v2065_v56  ;;  %v1978_v35 = vadd.f32 %v1940_v30, %v1683_v9 }
 0x21a   : > { %v1685_v54 = vpop.f32.mrf.mxu1  ;;  %v2041_v36 = vmax.f32 %v2009_v43, 0.0 }
 0x21b   : > { %v2010_v33 = vadd.f32 %v1978_v35, %v3696_v25  ;;  %v1686_v13 = vadd.f32 %v1685_v54, %v3730_v26 }
 0x21d   : > { %v2042_v37 = vmax.f32 %v2010_v33, 0.0  ;;  %v1894_v55 = vpop.f32.mrf.mxu2 }
 0x21e   : > { %v1979_v10 = vadd.f32 %v1894_v55, %v1637_v6 }
 0x21f   : > { %v2066_v63 = vpack.c.bf16 %v2042_v37, %v2041_v36  ;;  %v1638_v5 = vpop.f32.mrf.mxu0 }
 0x220   : > { %v1943_v62 = vpop.f32.mrf.mxu3  ;;  %v2011_v58 = vadd.f32 %v1979_v10, %v3707_v1  ;;  %v1639_v38 = vadd.f32 %v1638_v5, %v3739_v42 }
 0x221   : > { %2082 = vst [vmem:[%s3610_s5 + $0x78] sm:$0xff] %v2066_v63  ;;  %v1980_v47 = vadd.f32 %v1943_v62, %v1686_v13 }
 0x222   : > { %v1687_v49 = vpop.f32.mrf.mxu1  ;;  %v2043_v25 = vmax.f32 %v2011_v58, 0.0 }
 0x223   : > { %v2012_v28 = vadd.f32 %v1980_v47, %v3707_v1  ;;  %v1688_v19 = vadd.f32 %v1687_v49, %v3741_v21 }
 0x225   : > { %v2044_v22 = vmax.f32 %v2012_v28, 0.0  ;;  %v1896_v26 = vpop.f32.mrf.mxu2 }
 0x226   : > { %v1981_v48 = vadd.f32 %v1896_v26, %v1639_v38 }
 0x227   : > { %v2067_v2 = vpack.c.bf16 %v2044_v22, %v2043_v25  ;;  %v1641_v40 = vpop.f32.mrf.mxu0 }
 0x228   : > { %v1945_v3 = vpop.f32.mrf.mxu3  ;;  %v2013_v15 = vadd.f32 %v1981_v48, %v3726_v45  ;;  %v1642_v20 = vadd.f32 %v1641_v40, %v3758_v29 }
 0x229   : > { %2083 = vst [vmem:[%s3610_s5 + $0x88] sm:$0xff] %v2067_v2  ;;  %v1982_v51 = vadd.f32 %v1945_v3, %v1688_v19 }
 0x22a   : > { %v1690_v8 = vpop.f32.mrf.mxu1  ;;  %v2045_v1 = vmax.f32 %v2013_v15, 0.0 }
 0x22b   : > { %v2014_v0 = vadd.f32 %v1982_v51, %v3726_v45  ;;  %v1691_v42 = vadd.f32 %v1690_v8, %v3760_v46 }
 0x22d   : > { %v2046_v44 = vmax.f32 %v2014_v0, 0.0  ;;  %v1899_v21 = vpop.f32.mrf.mxu2 }
 0x22e   : > { %v1983_v23 = vadd.f32 %v1899_v21, %v1642_v20 }
 0x22f   : > { %v2068_v27 = vpack.c.bf16 %v2046_v44, %v2045_v1  ;;  %v1643_v59 = vpop.f32.mrf.mxu0 }
 0x230   : > { %v1948_v4 = vpop.f32.mrf.mxu3  ;;  %v2015_v24 = vadd.f32 %v1983_v23, %v3737_v31  ;;  %v1644_v7 = vadd.f32 %v1643_v59, %v3769_v16 }
 0x231   : > { %2084 = vst [vmem:[%s3610_s5 + $0x98] sm:$0xff] %v2068_v27  ;;  %v1984_v56 = vadd.f32 %v1948_v4, %v1691_v42 }
 0x232   : > { %v1692_v9 = vpop.f32.mrf.mxu1  ;;  %v2047_v45 = vmax.f32 %v2015_v24, 0.0 }
 0x233   : > { %v2016_v30 = vadd.f32 %v1984_v56, %v3737_v31  ;;  %v1693_v29 = vadd.f32 %v1692_v9, %v3771_v17 }
 0x235   : > { %v2048_v57 = vmax.f32 %v2016_v30, 0.0  ;;  %v1901_v46 = vpop.f32.mrf.mxu2 }
 0x236   : > { %v1985_v43 = vadd.f32 %v1901_v46, %v1644_v7 }
 0x237   : > { %v2069_v35 = vpack.c.bf16 %v2048_v57, %v2047_v45  ;;  %v1646_v36 = vpop.f32.mrf.mxu0 }
 0x238   : > { %v1950_v54 = vpop.f32.mrf.mxu3  ;;  %v2017_v63 = vadd.f32 %v1985_v43, %v3756_v11  ;;  %v1647_v62 = vadd.f32 %v1646_v36, %v3788_v39 }
 0x239   : > { %2085 = vst [vmem:[%s3610_s5 + $0xa8] sm:$0xff] %v2069_v35  ;;  %v1986_v33 = vadd.f32 %v1950_v54, %v1693_v29 }
 0x23a   : > { %v1695_v37 = vpop.f32.mrf.mxu1  ;;  %v2049_v31 = vmax.f32 %v2017_v63, 0.0 }
 0x23b   : > { %v2018_v6 = vadd.f32 %v1986_v33, %v3756_v11  ;;  %v1696_v16 = vadd.f32 %v1695_v37, %v3790_v12 }
 0x23d   : > { %v2050_v13 = vmax.f32 %v2018_v6, 0.0  ;;  %v1904_v17 = vpop.f32.mrf.mxu2 }
 0x23e   : > { %v1987_v47 = vadd.f32 %v1904_v17, %v1647_v62 }
 0x23f   : > { %v2070_v55 = vpack.c.bf16 %v2050_v13, %v2049_v31  ;;  %v1648_v49 = vpop.f32.mrf.mxu0 }
 0x240   : > { %v1953_v10 = vpop.f32.mrf.mxu3  ;;  %v2019_v28 = vadd.f32 %v1987_v47, %v3767_v61  ;;  %v1649_v38 = vadd.f32 %v1648_v49, %v3799_v60 }
 0x241   : > { %2086 = vst [vmem:[%s3610_s5 + $0xb8] sm:$0xff] %v2070_v55  ;;  %v1988_v5 = vadd.f32 %v1953_v10, %v1696_v16 }
 0x242   : > { %v1697_v58 = vpop.f32.mrf.mxu1  ;;  %v2051_v11 = vmax.f32 %v2019_v28, 0.0 }
 0x243   : > { %v2020_v25 = vadd.f32 %v1988_v5, %v3767_v61  ;;  %v1698_v39 = vadd.f32 %v1697_v58, %v3801_v18 }
 0x245   : > { %v2052_v22 = vmax.f32 %v2020_v25, 0.0  ;;  %v1906_v12 = vpop.f32.mrf.mxu2 }
 0x246   : > { %v1989_v26 = vadd.f32 %v1906_v12, %v1649_v38 }
 0x247   : > { %v2071_v2 = vpack.c.bf16 %v2052_v22, %v2051_v11  ;;  %v1651_v48 = vpop.f32.mrf.mxu0 }
 0x248   : > { %v1955_v19 = vpop.f32.mrf.mxu3  ;;  %v2021_v40 = vadd.f32 %v1989_v26, %v3786_v50  ;;  %v1652_v60 = vadd.f32 %v1651_v48, %v3818_v53 }
 0x249   : > { %2087 = vst [vmem:[%s3610_s5 + $0xc8] sm:$0xff] %v2071_v2  ;;  %v1990_v3 = vadd.f32 %v1955_v19, %v1698_v39 }
 0x24a   : > { %v1700_v51 = vpop.f32.mrf.mxu1  ;;  %v2053_v61 = vmax.f32 %v2021_v40, 0.0 }
 0x24b   : > { %v2022_v8 = vadd.f32 %v1990_v3, %v3786_v50  ;;  %v1701_v18 = vadd.f32 %v1700_v51, %v3820_v41 }
 0x24d   : > { %v2054_v15 = vmax.f32 %v2022_v8, 0.0  ;;  %v1909_v1 = vpop.f32.mrf.mxu2 }
 0x24e   : > { %v1991_v27 = vadd.f32 %v1909_v1, %v1652_v60 }
 0x24f   : > { %v2072_v0 = vpack.c.bf16 %v2054_v15, %v2053_v61  ;;  %v1653_v4 = vpop.f32.mrf.mxu0 }
 0x250   : > { %v1958_v44 = vpop.f32.mrf.mxu3  ;;  %v2023_v42 = vadd.f32 %v1991_v27, %v3797_v34  ;;  %v1654_v53 = vadd.f32 %v1653_v4, %v3827_v52 }
 0x251   : > { %2088 = vst [vmem:[%s3610_s5 + $0xd8] sm:$0xff] %v2072_v0  ;;  %v1992_v20 = vadd.f32 %v1958_v44, %v1701_v18 }
 0x252   : > { %v1702_v50 = vpop.f32.mrf.mxu1  ;;  %v2055_v23 = vmax.f32 %v2023_v42, 0.0 }
 0x253   : > { %v2024_v21 = vadd.f32 %v1992_v20, %v3797_v34  ;;  %v1703_v41 = vadd.f32 %v1702_v50, %v3829_v32 }
 0x255   : > { %v2056_v56 = vmax.f32 %v2024_v21, 0.0  ;;  %v1911_v9 = vpop.f32.mrf.mxu2 }
 0x256   : > { %v1993_v34 = vadd.f32 %v1911_v9, %v1654_v53 }
 0x257   : > { %v2073_v59 = vpack.c.bf16 %v2056_v56, %v2055_v23 }
 0x258   : > { %v1960_v24 = vpop.f32.mrf.mxu3  ;;  %v2025_v45 = vadd.f32 %v1993_v34, %v3816_v14 }
 0x259   : > { %2089 = vst [vmem:[%s3610_s5 + $0xe8] sm:$0xff] %v2073_v59  ;;  %v1994_v30 = vadd.f32 %v1960_v24, %v1703_v41 }
 0x25a   : > { %v2057_v52 = vmax.f32 %v2025_v45, 0.0 }
 0x25b   : > { %v2026_v57 = vadd.f32 %v1994_v30, %v3816_v14 }
 0x25d   : > { %v2058_v32 = vmax.f32 %v2026_v57, 0.0 }
 0x25f   : > { %v2074_v35 = vpack.c.bf16 %v2058_v32, %v2057_v52 }
 0x261   : > { %2090 = vst [vmem:[%s3610_s5 + $0xf8] sm:$0xff] %v2074_v35 }
 0x262   : > { %2905 = shalt.err (!%p2902_p5)
}
 0x263   : > { %s2959_s28 = smov 256   ;;  %s2960_s29 = smov 16  }
 0x264   : > { %2817 = dma.vmem_to_hbm [thread:$0]  (%p3021_p4), %s2108_s15, 4096, %s2110_s10, %s2092_s11, %s2959_s28, %s2959_s28, %s2960_s29  }
 0x265 PF: > { %p2823_p6 = scmp.ge.s32.totalorder %s2956_s17, 2  ;;  %s2124_s4 = sand.u32 1, %s2936_s12  }
 0x266   : > { %s2125_s5 = scalar_lea.sflag [#allocation3], %s2124_s4 }
 0x267   : > { %p2820_p7 = pnand %p2823_p6, %p3028_p8 }
 0x269   : > { %p2821_p9 = pneg %p2820_p7 }
 0x26b   : > { %2931 = dma.done.wait (%p2821_p9), %s2125_s5, 4096  }
 0x26c   : > { %2933 = vsyncadd (%p2821_p9), %s2125_s5, 4294963200  ;;  %s16_s17 = sadd.s32 1, %s2956_s17   ;;  %s3957_s12 = smov %s2940_s13 }
 0x26d   : > { %p13_p10 = scmp.ge.s32.totalorder %s16_s17, 4   ;;  %s3958_s13 = smov %s2944_s14 }
 0x26e   : > { %s3959_s14 = smov %s3034_s25  ;;  %s3960_s15 = smov %s2952_s16 }
 0x26f   : > { %s3961_s16 = smov %s3963_s20  ;;  %15 = sbr.rel (!%p13_p10) target bundleno = 4 (0x4), region = 75 }
 0x274   :  { %2131 = vsyncpa [#allocation3], 1 }
 0x275   :  { %2133 = vsyncpa [#allocation3 + $0x1], 1 }

</bundles_post_ra>
